<compile_context>
chip_gen: v6e
topology: v6e:2x2x1
jax: 0.10.0
libtpu: 0.0.40
codegen_flags: <defaults>
</compile_context>

<pallas_src>
import numpy as np

import jax
import jax.numpy as jnp
from jax.experimental import pallas as pl
from jax.experimental.pallas import tpu as pltpu


# ----------------------------------------------------------------------------
# Host-side operand preparation (fold BN + padding + stride into matmul form)
# ----------------------------------------------------------------------------
def _interp_matrix(out_size, in_size):
    """1-D PyTorch bilinear, align_corners=True interpolation matrix (out, in)."""
    if in_size == 1:
        return np.ones((out_size, 1), np.float32)
    src = np.arange(out_size, dtype=np.float64) * (in_size - 1) / (out_size - 1)
    lo = np.clip(np.floor(src).astype(np.int64), 0, in_size - 2)
    frac = src - lo
    m = np.zeros((out_size, in_size), np.float64)
    m[np.arange(out_size), lo] += 1.0 - frac
    m[np.arange(out_size), lo + 1] += frac
    return m.astype(np.float32)


def _conv_band_mats(w_hwio, bn_scale, bn_bias, h_in, w_in, stride, pad):
    """Express conv(K, stride, zero-pad) + folded BN scale, acting on lane-dense
    panels A[h, w*Cin+ci], as   out = sum_dy  R[dy] @ A @ Wb[dy] + bias_row.

      R[dy]  : (Hout, Hin)          0/1 row gather (dy tap, H padding, stride)
      Wb[dy] : (Win*Cin, Wout*Cout) band matrix (dx taps, W padding, stride, BN scale)
    """
    k, _, c_in, c_out = w_hwio.shape
    h_out = (h_in + 2 * pad - k) // stride + 1
    w_out = (w_in + 2 * pad - k) // stride + 1
    w_sc = np.asarray(w_hwio, np.float64) * np.asarray(bn_scale, np.float64).reshape(1, 1, 1, c_out)
    rs = np.zeros((k, h_out, h_in), np.float32)
    wb = np.zeros((k, w_in * c_in, w_out * c_out), np.float64)
    for dy in range(k):
        for i in range(h_out):
            r = stride * i + dy - pad
            if 0 <= r < h_in:
                rs[dy, i, r] = 1.0
        for j in range(w_out):
            for dx in range(k):
                wq = stride * j + dx - pad
                if 0 <= wq < w_in:
                    wb[dy, wq * c_in:(wq + 1) * c_in, j * c_out:(j + 1) * c_out] = w_sc[dy, dx]
    bias = np.tile(np.asarray(bn_bias, np.float32), w_out).reshape(1, w_out * c_out)
    return rs, wb, bias, h_out, w_out


def pick_block_batch(n, h, max_rows=128):
    """Images per grid step.  Cap the panel at max_rows rows (keeps the block-diag
    row operators small); keep >=2 grid steps on v7x (2 TensorCores), single grid
    step on v5e/v6e (1 TC: fewer steps is strictly better)."""
    cap = max(1, max_rows // h)
    try:
        kind = jax.devices()[0].device_kind.lower()
    except Exception:
        kind = ""
    b = min(cap, n)
    if "7" in kind and n >= 2:            # v7x: B <= ceil(N/2) -> grid has >= 2 steps
        b = min(b, -(-n // 2))
    return max(1, b)


def prepare_operands(params, h, w, b):
    """Rewrite every FPAv2 op as lane-dense 2-D matmuls for a B-image block;
    MXU operands -> bf16, block-diagonal row operators, packed biases."""
    p = {k: np.asarray(v) for k, v in params.items()}
    cin, cout = p["wc1"].shape

    # down2_1: 5x5 s2 p2 cin->cin ; down3_1: 3x3 s2 p1 ; down2_2: 5x5 s1 p2 cin->cout ;
    # down3_2: 3x3 s1 p1 cin->cout
    r21, w21, b21, h2, w2 = _conv_band_mats(p["w21"], p["s21"], p["b21"], h, w, 2, 2)
    r31, w31, b31, h3, w3 = _conv_band_mats(p["w31"], p["s31"], p["b31"], h2, w2, 2, 1)
    r22, w22, b22, _, _ = _conv_band_mats(p["w22"], p["s22"], p["b22"], h2, w2, 1, 2)
    r32, w32, b32, _, _ = _conv_band_mats(p["w32"], p["s32"], p["b32"], h3, w3, 1, 1)

    def bd_rcat(r_taps):
        # Stack the K per-tap gathers along rows, block-diagonal over the B images,
        # each tap block padded to a multiple of 16 rows (aligned bf16 slices in-kernel).
        k, h_out, h_in = r_taps.shape
        rows = b * h_out
        rows_pad = ((rows + 15) // 16) * 16
        out = np.zeros((k * rows_pad, b * h_in), np.float32)
        for dy in range(k):
            out[dy * rows_pad:dy * rows_pad + rows] = np.kron(np.eye(b, dtype=np.float32), r_taps[dy])
        return out

    eye_c = np.eye(cout, dtype=np.float64)
    # bilinear x2 (align_corners=True): panel -> (I_B kron U) @ panel @ kron(Uw^T, I_C)
    u4 = np.kron(np.eye(b), _interp_matrix(2 * h3, h3))
    m4 = np.kron(_interp_matrix(2 * w3, w3).T, eye_c)
    u8 = np.kron(np.eye(b), _interp_matrix(2 * h2, h2))
    m8 = np.kron(_interp_matrix(2 * w2, w2).T, eye_c)

    # conv1 (1x1 + BN scale) and glob (GAP + 1x1, W-tiled), lane-concatenated
    wc1 = np.kron(np.eye(w, dtype=np.float64),
                  np.asarray(p["wc1"], np.float64) * np.asarray(p["sc1"], np.float64).reshape(1, cout))
    wg = np.kron(np.ones((w, w), np.float64) / w, np.asarray(p["wglob"], np.float64))
    c1g = np.concatenate([wc1, wg], axis=1)                      # (W*Cin, 2*W*Cout)

    # per-image row average + replicate over H rows (glob's GAP + x16 upsample)
    mga = np.kron(np.eye(b), np.full((h, h), 1.0 / h))           # (B*H, B*H)

    # packed bias rows: [b21, b31, b22, b32, bc1]
    wcout = w * cout
    rows = [b21.ravel(), b31.ravel(), b22.ravel(), b32.ravel(),
            np.tile(np.asarray(p["bc1"], np.float32), w)]
    width = max(wcout, max(r.size for r in rows))
    bias = np.zeros((len(rows), width), np.float32)
    for i, row in enumerate(rows):
        bias[i, :row.size] = row

    def bf16(a):
        return jnp.asarray(a, jnp.bfloat16)

    ops = dict(
        r21=bf16(bd_rcat(r21)), w21=bf16(w21),
        r31=bf16(bd_rcat(r31)), w31=bf16(w31),
        r22=bf16(bd_rcat(r22)), w22=bf16(w22),
        r32=bf16(bd_rcat(r32)), w32=bf16(w32),
        u4=bf16(u4), m4=bf16(m4), u8=bf16(u8), m8=bf16(m8),
        c1g=bf16(c1g), mga=bf16(mga),
        bias=jnp.asarray(bias, jnp.float32),
    )
    meta = dict(b=b, bh2=b * h2, bh3=b * h3, wcout=wcout)
    return ops, meta


_WEIGHT_NAMES = ("r21", "w21", "r31", "w31", "r22", "w22", "r32", "w32",
                 "u4", "m4", "u8", "m8", "c1g", "mga", "bias")


# ----------------------------------------------------------------------------
# Fused FPAv2 forward kernel (one grid step per B-image block)
# ----------------------------------------------------------------------------
def _build_kernel(meta):
    bh2, bh3, wcout = meta["bh2"], meta["bh3"], meta["wcout"]

    def kernel(x_ref,
               r21, w21, r31, w31, r22, w22, r32, w32,
               u4, m4, u8, m8, c1g_ref, mga_ref, bias_ref,
               o_ref):
        f32, bf16 = jnp.float32, jnp.bfloat16

        def elu(y):  # ELU(alpha=1), fp32 elementwise (clamp exp arg on unselected branch)
            return jnp.where(y > 0, y, jnp.exp(jnp.minimum(y, 0.0)) - 1.0)

        def conv_bn_elu(pb, r_ref, w_ref, bias_row, out_rows):
            # Gather-first, collapsed K-tap loop: ONE stacked gather matmul, then K
            # band matmuls -> K+1 MXU pushes, all operands bf16, fp32 accumulation.
            k = w_ref.shape[0]
            rows_pad = r_ref.shape[0] // k
            n_out = w_ref.shape[2]
            g = jnp.dot(r_ref[...], pb, preferred_element_type=f32).astype(bf16)  # exact (R is 0/1)
            acc = jnp.zeros((rows_pad, n_out), f32)
            for dy in range(k):
                acc = acc + jnp.dot(g[dy * rows_pad:(dy + 1) * rows_pad, :], w_ref[dy],
                                    preferred_element_type=f32)
            if out_rows != rows_pad:
                acc = acc[:out_rows, :]
            return elu(acc + bias_row)

        def upsample_x2(pb, u_ref, m_ref):
            # bilinear x2, align_corners=True: block-diag row-interp + Kron column-interp
            t = jnp.dot(u_ref[...], pb, preferred_element_type=f32).astype(bf16)
            return jnp.dot(t, m_ref[...], preferred_element_type=f32)

        xb = x_ref[...].astype(bf16)                              # (B*H, W*Cin), cast once

        c1g = c1g_ref[...]
        wc1, wg = c1g[:, :wcout], c1g[:, wcout:]                  # 128-aligned lane slices
        bias_all = bias_ref[...]
        b21 = bias_all[0:1, :w21.shape[2]]
        b31 = bias_all[1:2, :w31.shape[2]]
        b22 = bias_all[2:3, :w22.shape[2]]
        b32 = bias_all[3:4, :w32.shape[2]]
        bc1 = bias_all[4:5, :wcout]

        # glob branch: per-image GAP (averaging+replicating row matmul) -> 1x1 conv
        gm = jnp.dot(mga_ref[...], xb, preferred_element_type=f32).astype(bf16)
        x_glob = jnp.dot(gm, wg, preferred_element_type=f32)      # (B*H, W*Cout)

        # conv1 branch: 1x1 conv + BN + ELU
        x1 = elu(jnp.dot(xb, wc1, preferred_element_type=f32) + bc1)

        # down path
        d2 = conv_bn_elu(xb, r21, w21, b21, bh2)                  # down2_1 : (B*H/2, W/2*Cin)
        d2b = d2.astype(bf16)                                     # cast once, feeds two convs
        d3 = conv_bn_elu(d2b, r31, w31, b31, bh3)                 # down3_1 : (B*H/4, W/4*Cin)
        d2 = conv_bn_elu(d2b, r22, w22, b22, bh2)                 # down2_2 : (B*H/2, W/2*Cout)
        d3 = conv_bn_elu(d3.astype(bf16), r32, w32, b32, bh3)     # down3_2 : (B*H/4, W/4*Cout)
        d3 = upsample_x2(d3.astype(bf16), u4, m4)                 # (B*H/2, W/2*Cout)
        d2 = upsample_x2((d2 + d3).astype(bf16), u8, m8)          # (B*H,   W*Cout)

        o_ref[...] = (x1 * d2 + x_glob).astype(o_ref.dtype)       # lane-dense 512-wide store

    return kernel


def fpa_forward(x_nhwc, ops, meta):
    n, h, w, cin = x_nhwc.shape
    b, wcout = meta["b"], meta["wcout"]
    cout = wcout // w
    n_pad = -(-n // b) * b
    if n_pad != n:                                                # pad batch to a multiple of B
        x_nhwc = jnp.concatenate(
            [x_nhwc, jnp.zeros((n_pad - n, h, w, cin), x_nhwc.dtype)], axis=0)
    x2 = x_nhwc.reshape(n_pad * h, w * cin)                       # lane-dense row-stacked panels
    weights = [ops[name] for name in _WEIGHT_NAMES]
    n_steps = n_pad // b

    def const_spec(a):
        if a.ndim == 3:
            return pl.BlockSpec(a.shape, lambda i: (0, 0, 0))
        return pl.BlockSpec(a.shape, lambda i: (0, 0))

    out2 = pl.pallas_call(
        _build_kernel(meta),
        out_shape=jax.ShapeDtypeStruct((n_pad * h, wcout), x_nhwc.dtype),
        grid=(n_steps,),
        in_specs=[pl.BlockSpec((b * h, w * cin), lambda i: (i, 0))]
                 + [const_spec(a) for a in weights],
        out_specs=pl.BlockSpec((b * h, wcout), lambda i: (i, 0)),
        compiler_params=pltpu.CompilerParams(
            dimension_semantics=("parallel",),                    # shards grid steps over v7x's 2 TCs
            vmem_limit_bytes=32 * 1024 * 1024),                   # safe on all generations
    )(x2, *weights)
    return out2.reshape(n_pad, h, w, cout)[:n]


# ----------------------------------------------------------------------------
# Pure-JAX fp32 reference and parameter construction
# ----------------------------------------------------------------------------
def fpa_reference(x, p):
    def conv_bn_elu(x, w, scale, bias, stride, pad):
        y = jax.lax.conv_general_dilated(
            x, w, (stride, stride), ((pad, pad), (pad, pad)),
            dimension_numbers=("NHWC", "HWIO", "NHWC"),
            precision=jax.lax.Precision.HIGHEST)
        y = y * scale.reshape(1, 1, 1, -1) + bias.reshape(1, 1, 1, -1)
        return jnp.where(y > 0, y, jnp.exp(jnp.minimum(y, 0.0)) - 1.0)

    def up2(x):
        _, h, w, _ = x.shape
        uh = jnp.asarray(_interp_matrix(2 * h, h))
        uw = jnp.asarray(_interp_matrix(2 * w, w))
        x = jnp.einsum("oh,nhwc->nowc", uh, x)
        return jnp.einsum("pw,nowc->nopc", uw, x)

    pooled = jnp.mean(x, axis=(1, 2))                             # (N, Cin)
    x_glob = pooled @ p["wglob"]                                  # x16 upsample of 1x1 -> constant map

    d2 = conv_bn_elu(x, p["w21"], p["s21"], p["b21"], 2, 2)
    d3 = conv_bn_elu(d2, p["w31"], p["s31"], p["b31"], 2, 1)
    d2 = conv_bn_elu(d2, p["w22"], p["s22"], p["b22"], 1, 2)
    d3 = conv_bn_elu(d3, p["w32"], p["s32"], p["b32"], 1, 1)
    d3 = up2(d3)
    d2 = d2 + d3
    d2 = up2(d2)
    x1 = conv_bn_elu(x, p["wc1"][None, None], p["sc1"], p["bc1"], 1, 0)
    return x1 * d2 + x_glob[:, None, None, :]


def make_params(key, cin, cout):
    keys = iter(jax.random.split(key, 26))
    eps = 1e-5

    def w(shape, scale=0.1):
        return scale * jax.random.normal(next(keys), shape, jnp.float32)

    def bn(c):  # eval-mode BatchNorm folded into scale / bias
        gamma = 1.0 + 0.1 * jax.random.normal(next(keys), (c,), jnp.float32)
        beta = 0.1 * jax.random.normal(next(keys), (c,), jnp.float32)
        mean = 0.1 * jax.random.normal(next(keys), (c,), jnp.float32)
        var = 0.9 + 0.1 * jnp.abs(jax.random.normal(next(keys), (c,), jnp.float32))
        scale = gamma / jnp.sqrt(var + eps)
        return scale, beta - mean * scale

    p = {}
    p["w21"] = w((5, 5, cin, cin));   p["s21"], p["b21"] = bn(cin)
    p["w31"] = w((3, 3, cin, cin));   p["s31"], p["b31"] = bn(cin)
    p["w22"] = w((5, 5, cin, cout));  p["s22"], p["b22"] = bn(cout)
    p["w32"] = w((3, 3, cin, cout));  p["s32"], p["b32"] = bn(cout)
    p["wc1"] = w((cin, cout));        p["sc1"], p["bc1"] = bn(cout)
    p["wglob"] = w((cin, cout))
    return p


if __name__ == "__main__":
    key = jax.random.PRNGKey(0)
    N, Cin, Cout = 2, 4, 32
    H = W = 16   # FPAv2's forward implies a 16x16 feature map (glob branch upsamples 1x1 by x16)

    kx, kp = jax.random.split(key)
    x_nchw = jax.random.normal(kx, (N, Cin, H, W), jnp.float32)      # PyTorch NCHW input
    x_nhwc = jnp.transpose(x_nchw, (0, 2, 3, 1))                     # kernel layout NHWC

    params = make_params(kp, Cin, Cout)
    B = pick_block_batch(N, H)                                       # images per grid step
    ops, meta = prepare_operands(params, H, W, B)

    out = jax.block_until_ready(fpa_forward(x_nhwc, ops, meta))
    ref = jax.block_until_ready(fpa_reference(x_nhwc, params))

    assert out.shape == (N, H, W, Cout), out.shape
    err = jnp.abs(out - ref)
    # bf16 MXU operands vs fp32-HIGHEST reference -> combined abs/rel tolerance
    ok = bool(jnp.all(err <= 4e-2 + 4e-2 * jnp.abs(ref)))
    if ok:
        print("KERNEL_OK")
    else:
        print(f"KERNEL_MISMATCH max_err={float(jnp.max(err))}")
</pallas_src>

<mosaic_0001>
module attributes {stable_mosaic.version = 11 : i64} {
  func.func @kernel(%arg0: i32, %arg1: memref<32x64xf32, #tpu.memory_space<vmem>>, %arg2: memref<80x32xbf16, #tpu.memory_space<vmem>>, %arg3: memref<5x64x32xbf16, #tpu.memory_space<vmem>>, %arg4: memref<48x16xbf16, #tpu.memory_space<vmem>>, %arg5: memref<3x32x16xbf16, #tpu.memory_space<vmem>>, %arg6: memref<80x16xbf16, #tpu.memory_space<vmem>>, %arg7: memref<5x32x256xbf16, #tpu.memory_space<vmem>>, %arg8: memref<48x8xbf16, #tpu.memory_space<vmem>>, %arg9: memref<3x16x128xbf16, #tpu.memory_space<vmem>>, %arg10: memref<16x8xbf16, #tpu.memory_space<vmem>>, %arg11: memref<128x256xbf16, #tpu.memory_space<vmem>>, %arg12: memref<32x16xbf16, #tpu.memory_space<vmem>>, %arg13: memref<256x512xbf16, #tpu.memory_space<vmem>>, %arg14: memref<64x1024xbf16, #tpu.memory_space<vmem>>, %arg15: memref<32x32xbf16, #tpu.memory_space<vmem>>, %arg16: memref<5x512xf32, #tpu.memory_space<vmem>>, %arg17: memref<32x512xf32, #tpu.memory_space<vmem>>) attributes {dimension_semantics = [#tpu.dimension_semantics<parallel>], iteration_bounds = array<i64: 1>, scalar_prefetch = 0 : i64, scratch_operands = 0 : i64, tpu.core_type = #tpu.core_type<tc>, window_params = [{transform_indices = @transform_0, window_bounds = array<i64: 32, 64>}, {pipeline_mode = #tpu.pipeline_mode<synchronous>, transform_indices = @transform_1, window_bounds = array<i64: 80, 32>}, {pipeline_mode = #tpu.pipeline_mode<synchronous>, transform_indices = @transform_2, window_bounds = array<i64: 5, 64, 32>}, {pipeline_mode = #tpu.pipeline_mode<synchronous>, transform_indices = @transform_3, window_bounds = array<i64: 48, 16>}, {pipeline_mode = #tpu.pipeline_mode<synchronous>, transform_indices = @transform_4, window_bounds = array<i64: 3, 32, 16>}, {pipeline_mode = #tpu.pipeline_mode<synchronous>, transform_indices = @transform_5, window_bounds = array<i64: 80, 16>}, {pipeline_mode = #tpu.pipeline_mode<synchronous>, transform_indices = @transform_6, window_bounds = array<i64: 5, 32, 256>}, {pipeline_mode = #tpu.pipeline_mode<synchronous>, transform_indices = @transform_7, window_bounds = array<i64: 48, 8>}, {pipeline_mode = #tpu.pipeline_mode<synchronous>, transform_indices = @transform_8, window_bounds = array<i64: 3, 16, 128>}, {pipeline_mode = #tpu.pipeline_mode<synchronous>, transform_indices = @transform_9, window_bounds = array<i64: 16, 8>}, {pipeline_mode = #tpu.pipeline_mode<synchronous>, transform_indices = @transform_10, window_bounds = array<i64: 128, 256>}, {pipeline_mode = #tpu.pipeline_mode<synchronous>, transform_indices = @transform_11, window_bounds = array<i64: 32, 16>}, {pipeline_mode = #tpu.pipeline_mode<synchronous>, transform_indices = @transform_12, window_bounds = array<i64: 256, 512>}, {pipeline_mode = #tpu.pipeline_mode<synchronous>, transform_indices = @transform_13, window_bounds = array<i64: 64, 1024>}, {pipeline_mode = #tpu.pipeline_mode<synchronous>, transform_indices = @transform_14, window_bounds = array<i64: 32, 32>}, {pipeline_mode = #tpu.pipeline_mode<synchronous>, transform_indices = @transform_15, window_bounds = array<i64: 5, 512>}, {transform_indices = @transform_16, window_bounds = array<i64: 32, 512>}]} {
    %c0 = arith.constant 0 : index
    %c0_0 = arith.constant 0 : index
    %0 = vector.load %arg1[%c0, %c0_0] : memref<32x64xf32, #tpu.memory_space<vmem>>, vector<32x64xf32>
    %1 = arith.truncf %0 : vector<32x64xf32> to vector<32x64xbf16>
    %c0_1 = arith.constant 0 : index
    %c0_2 = arith.constant 0 : index
    %2 = vector.load %arg14[%c0_1, %c0_2] : memref<64x1024xbf16, #tpu.memory_space<vmem>>, vector<64x1024xbf16>
    %3 = vector.extract_strided_slice %2 {offsets = [0, 0], sizes = [64, 512], strides = [1, 1]} : vector<64x1024xbf16> to vector<64x512xbf16>
    %4 = vector.extract_strided_slice %2 {offsets = [0, 512], sizes = [64, 512], strides = [1, 1]} : vector<64x1024xbf16> to vector<64x512xbf16>
    %c0_3 = arith.constant 0 : index
    %c0_4 = arith.constant 0 : index
    %5 = vector.load %arg16[%c0_3, %c0_4] : memref<5x512xf32, #tpu.memory_space<vmem>>, vector<5x512xf32>
    %6 = vector.extract_strided_slice %5 {offsets = [0, 0], sizes = [1, 32], strides = [1, 1]} : vector<5x512xf32> to vector<1x32xf32>
    %7 = vector.extract_strided_slice %5 {offsets = [1, 0], sizes = [1, 16], strides = [1, 1]} : vector<5x512xf32> to vector<1x16xf32>
    %8 = vector.extract_strided_slice %5 {offsets = [2, 0], sizes = [1, 256], strides = [1, 1]} : vector<5x512xf32> to vector<1x256xf32>
    %9 = vector.extract_strided_slice %5 {offsets = [3, 0], sizes = [1, 128], strides = [1, 1]} : vector<5x512xf32> to vector<1x128xf32>
    %10 = vector.extract_strided_slice %5 {offsets = [4, 0], sizes = [1, 512], strides = [1, 1]} : vector<5x512xf32> to vector<1x512xf32>
    %c0_5 = arith.constant 0 : index
    %c0_6 = arith.constant 0 : index
    %11 = vector.load %arg15[%c0_5, %c0_6] : memref<32x32xbf16, #tpu.memory_space<vmem>>, vector<32x32xbf16>
    %cst = arith.constant dense<0.000000e+00> : vector<32x64xf32>
    %12 = tpu.matmul %11, %1, %cst {dimension_numbers = #tpu.dot_dimension_numbers<[1], [0], [0], [1], [0, 0, 1, 1], [], []>} : vector<32x32xbf16>, vector<32x64xbf16>, vector<32x64xf32> -> vector<32x64xf32>
    %13 = arith.truncf %12 : vector<32x64xf32> to vector<32x64xbf16>
    %cst_7 = arith.constant dense<0.000000e+00> : vector<32x512xf32>
    %14 = tpu.matmul %13, %4, %cst_7 {dimension_numbers = #tpu.dot_dimension_numbers<[1], [0], [0], [1], [0, 0, 1, 1], [], []>} : vector<32x64xbf16>, vector<64x512xbf16>, vector<32x512xf32> -> vector<32x512xf32>
    %cst_8 = arith.constant dense<0.000000e+00> : vector<32x512xf32>
    %15 = tpu.matmul %1, %3, %cst_8 {dimension_numbers = #tpu.dot_dimension_numbers<[1], [0], [0], [1], [0, 0, 1, 1], [], []>} : vector<32x64xbf16>, vector<64x512xbf16>, vector<32x512xf32> -> vector<32x512xf32>
    %16 = vector.broadcast %10 : vector<1x512xf32> to vector<32x512xf32>
    %17 = arith.addf %15, %16 : vector<32x512xf32>
    %cst_9 = arith.constant 0.000000e+00 : f32
    %18 = vector.broadcast %cst_9 : f32 to vector<32x512xf32>
    %19 = arith.cmpf ogt, %17, %18 : vector<32x512xf32>
    %cst_10 = arith.constant 0.000000e+00 : f32
    %20 = vector.broadcast %cst_10 : f32 to vector<32x512xf32>
    %21 = arith.minimumf %17, %20 : vector<32x512xf32>
    %22 = math.exp %21 : vector<32x512xf32>
    %cst_11 = arith.constant 1.000000e+00 : f32
    %23 = vector.broadcast %cst_11 : f32 to vector<32x512xf32>
    %24 = arith.subf %22, %23 : vector<32x512xf32>
    %25 = arith.select %19, %17, %24 : vector<32x512xi1>, vector<32x512xf32>
    %c0_12 = arith.constant 0 : index
    %c0_13 = arith.constant 0 : index
    %26 = vector.load %arg2[%c0_12, %c0_13] : memref<80x32xbf16, #tpu.memory_space<vmem>>, vector<80x32xbf16>
    %cst_14 = arith.constant dense<0.000000e+00> : vector<80x64xf32>
    %27 = tpu.matmul %26, %1, %cst_14 {dimension_numbers = #tpu.dot_dimension_numbers<[1], [0], [0], [1], [0, 0, 1, 1], [], []>} : vector<80x32xbf16>, vector<32x64xbf16>, vector<80x64xf32> -> vector<80x64xf32>
    %28 = arith.truncf %27 : vector<80x64xf32> to vector<80x64xbf16>
    %cst_15 = arith.constant 0.000000e+00 : f32
    %29 = vector.broadcast %cst_15 : f32 to vector<16x32xf32>
    %30 = vector.extract_strided_slice %28 {offsets = [0, 0], sizes = [16, 64], strides = [1, 1]} : vector<80x64xbf16> to vector<16x64xbf16>
    %c0_16 = arith.constant 0 : index
    %c0_17 = arith.constant 0 : index
    %c0_18 = arith.constant 0 : index
    %31 = vector.load %arg3[%c0_16, %c0_17, %c0_18] : memref<5x64x32xbf16, #tpu.memory_space<vmem>>, vector<1x64x32xbf16>
    %32 = vector.shape_cast %31 : vector<1x64x32xbf16> to vector<64x32xbf16>
    %cst_19 = arith.constant dense<0.000000e+00> : vector<16x32xf32>
    %33 = tpu.matmul %30, %32, %cst_19 {dimension_numbers = #tpu.dot_dimension_numbers<[1], [0], [0], [1], [0, 0, 1, 1], [], []>} : vector<16x64xbf16>, vector<64x32xbf16>, vector<16x32xf32> -> vector<16x32xf32>
    %34 = arith.addf %29, %33 : vector<16x32xf32>
    %35 = vector.extract_strided_slice %28 {offsets = [16, 0], sizes = [16, 64], strides = [1, 1]} : vector<80x64xbf16> to vector<16x64xbf16>
    %c1 = arith.constant 1 : index
    %c0_20 = arith.constant 0 : index
    %c0_21 = arith.constant 0 : index
    %36 = vector.load %arg3[%c1, %c0_20, %c0_21] : memref<5x64x32xbf16, #tpu.memory_space<vmem>>, vector<1x64x32xbf16>
    %37 = vector.shape_cast %36 : vector<1x64x32xbf16> to vector<64x32xbf16>
    %cst_22 = arith.constant dense<0.000000e+00> : vector<16x32xf32>
    %38 = tpu.matmul %35, %37, %cst_22 {dimension_numbers = #tpu.dot_dimension_numbers<[1], [0], [0], [1], [0, 0, 1, 1], [], []>} : vector<16x64xbf16>, vector<64x32xbf16>, vector<16x32xf32> -> vector<16x32xf32>
    %39 = arith.addf %34, %38 : vector<16x32xf32>
    %40 = vector.extract_strided_slice %28 {offsets = [32, 0], sizes = [16, 64], strides = [1, 1]} : vector<80x64xbf16> to vector<16x64xbf16>
    %c2 = arith.constant 2 : index
    %c0_23 = arith.constant 0 : index
    %c0_24 = arith.constant 0 : index
    %41 = vector.load %arg3[%c2, %c0_23, %c0_24] : memref<5x64x32xbf16, #tpu.memory_space<vmem>>, vector<1x64x32xbf16>
    %42 = vector.shape_cast %41 : vector<1x64x32xbf16> to vector<64x32xbf16>
    %cst_25 = arith.constant dense<0.000000e+00> : vector<16x32xf32>
    %43 = tpu.matmul %40, %42, %cst_25 {dimension_numbers = #tpu.dot_dimension_numbers<[1], [0], [0], [1], [0, 0, 1, 1], [], []>} : vector<16x64xbf16>, vector<64x32xbf16>, vector<16x32xf32> -> vector<16x32xf32>
    %44 = arith.addf %39, %43 : vector<16x32xf32>
    %45 = vector.extract_strided_slice %28 {offsets = [48, 0], sizes = [16, 64], strides = [1, 1]} : vector<80x64xbf16> to vector<16x64xbf16>
    %c3 = arith.constant 3 : index
    %c0_26 = arith.constant 0 : index
    %c0_27 = arith.constant 0 : index
    %46 = vector.load %arg3[%c3, %c0_26, %c0_27] : memref<5x64x32xbf16, #tpu.memory_space<vmem>>, vector<1x64x32xbf16>
    %47 = vector.shape_cast %46 : vector<1x64x32xbf16> to vector<64x32xbf16>
    %cst_28 = arith.constant dense<0.000000e+00> : vector<16x32xf32>
    %48 = tpu.matmul %45, %47, %cst_28 {dimension_numbers = #tpu.dot_dimension_numbers<[1], [0], [0], [1], [0, 0, 1, 1], [], []>} : vector<16x64xbf16>, vector<64x32xbf16>, vector<16x32xf32> -> vector<16x32xf32>
    %49 = arith.addf %44, %48 : vector<16x32xf32>
    %50 = vector.extract_strided_slice %28 {offsets = [64, 0], sizes = [16, 64], strides = [1, 1]} : vector<80x64xbf16> to vector<16x64xbf16>
    %c4 = arith.constant 4 : index
    %c0_29 = arith.constant 0 : index
    %c0_30 = arith.constant 0 : index
    %51 = vector.load %arg3[%c4, %c0_29, %c0_30] : memref<5x64x32xbf16, #tpu.memory_space<vmem>>, vector<1x64x32xbf16>
    %52 = vector.shape_cast %51 : vector<1x64x32xbf16> to vector<64x32xbf16>
    %cst_31 = arith.constant dense<0.000000e+00> : vector<16x32xf32>
    %53 = tpu.matmul %50, %52, %cst_31 {dimension_numbers = #tpu.dot_dimension_numbers<[1], [0], [0], [1], [0, 0, 1, 1], [], []>} : vector<16x64xbf16>, vector<64x32xbf16>, vector<16x32xf32> -> vector<16x32xf32>
    %54 = arith.addf %49, %53 : vector<16x32xf32>
    %55 = vector.broadcast %6 : vector<1x32xf32> to vector<16x32xf32>
    %56 = arith.addf %54, %55 : vector<16x32xf32>
    %cst_32 = arith.constant 0.000000e+00 : f32
    %57 = vector.broadcast %cst_32 : f32 to vector<16x32xf32>
    %58 = arith.cmpf ogt, %56, %57 : vector<16x32xf32>
    %cst_33 = arith.constant 0.000000e+00 : f32
    %59 = vector.broadcast %cst_33 : f32 to vector<16x32xf32>
    %60 = arith.minimumf %56, %59 : vector<16x32xf32>
    %61 = math.exp %60 : vector<16x32xf32>
    %cst_34 = arith.constant 1.000000e+00 : f32
    %62 = vector.broadcast %cst_34 : f32 to vector<16x32xf32>
    %63 = arith.subf %61, %62 : vector<16x32xf32>
    %64 = arith.select %58, %56, %63 : vector<16x32xi1>, vector<16x32xf32>
    %65 = arith.truncf %64 : vector<16x32xf32> to vector<16x32xbf16>
    %c0_35 = arith.constant 0 : index
    %c0_36 = arith.constant 0 : index
    %66 = vector.load %arg4[%c0_35, %c0_36] : memref<48x16xbf16, #tpu.memory_space<vmem>>, vector<48x16xbf16>
    %cst_37 = arith.constant dense<0.000000e+00> : vector<48x32xf32>
    %67 = tpu.matmul %66, %65, %cst_37 {dimension_numbers = #tpu.dot_dimension_numbers<[1], [0], [0], [1], [0, 0, 1, 1], [], []>} : vector<48x16xbf16>, vector<16x32xbf16>, vector<48x32xf32> -> vector<48x32xf32>
    %68 = arith.truncf %67 : vector<48x32xf32> to vector<48x32xbf16>
    %cst_38 = arith.constant 0.000000e+00 : f32
    %69 = vector.broadcast %cst_38 : f32 to vector<16x16xf32>
    %70 = vector.extract_strided_slice %68 {offsets = [0, 0], sizes = [16, 32], strides = [1, 1]} : vector<48x32xbf16> to vector<16x32xbf16>
    %c0_39 = arith.constant 0 : index
    %c0_40 = arith.constant 0 : index
    %c0_41 = arith.constant 0 : index
    %71 = vector.load %arg5[%c0_39, %c0_40, %c0_41] : memref<3x32x16xbf16, #tpu.memory_space<vmem>>, vector<1x32x16xbf16>
    %72 = vector.shape_cast %71 : vector<1x32x16xbf16> to vector<32x16xbf16>
    %cst_42 = arith.constant dense<0.000000e+00> : vector<16x16xf32>
    %73 = tpu.matmul %70, %72, %cst_42 {dimension_numbers = #tpu.dot_dimension_numbers<[1], [0], [0], [1], [0, 0, 1, 1], [], []>} : vector<16x32xbf16>, vector<32x16xbf16>, vector<16x16xf32> -> vector<16x16xf32>
    %74 = arith.addf %69, %73 : vector<16x16xf32>
    %75 = vector.extract_strided_slice %68 {offsets = [16, 0], sizes = [16, 32], strides = [1, 1]} : vector<48x32xbf16> to vector<16x32xbf16>
    %c1_43 = arith.constant 1 : index
    %c0_44 = arith.constant 0 : index
    %c0_45 = arith.constant 0 : index
    %76 = vector.load %arg5[%c1_43, %c0_44, %c0_45] : memref<3x32x16xbf16, #tpu.memory_space<vmem>>, vector<1x32x16xbf16>
    %77 = vector.shape_cast %76 : vector<1x32x16xbf16> to vector<32x16xbf16>
    %cst_46 = arith.constant dense<0.000000e+00> : vector<16x16xf32>
    %78 = tpu.matmul %75, %77, %cst_46 {dimension_numbers = #tpu.dot_dimension_numbers<[1], [0], [0], [1], [0, 0, 1, 1], [], []>} : vector<16x32xbf16>, vector<32x16xbf16>, vector<16x16xf32> -> vector<16x16xf32>
    %79 = arith.addf %74, %78 : vector<16x16xf32>
    %80 = vector.extract_strided_slice %68 {offsets = [32, 0], sizes = [16, 32], strides = [1, 1]} : vector<48x32xbf16> to vector<16x32xbf16>
    %c2_47 = arith.constant 2 : index
    %c0_48 = arith.constant 0 : index
    %c0_49 = arith.constant 0 : index
    %81 = vector.load %arg5[%c2_47, %c0_48, %c0_49] : memref<3x32x16xbf16, #tpu.memory_space<vmem>>, vector<1x32x16xbf16>
    %82 = vector.shape_cast %81 : vector<1x32x16xbf16> to vector<32x16xbf16>
    %cst_50 = arith.constant dense<0.000000e+00> : vector<16x16xf32>
    %83 = tpu.matmul %80, %82, %cst_50 {dimension_numbers = #tpu.dot_dimension_numbers<[1], [0], [0], [1], [0, 0, 1, 1], [], []>} : vector<16x32xbf16>, vector<32x16xbf16>, vector<16x16xf32> -> vector<16x16xf32>
    %84 = arith.addf %79, %83 : vector<16x16xf32>
    %85 = vector.extract_strided_slice %84 {offsets = [0, 0], sizes = [8, 16], strides = [1, 1]} : vector<16x16xf32> to vector<8x16xf32>
    %86 = vector.broadcast %7 : vector<1x16xf32> to vector<8x16xf32>
    %87 = arith.addf %85, %86 : vector<8x16xf32>
    %cst_51 = arith.constant 0.000000e+00 : f32
    %88 = vector.broadcast %cst_51 : f32 to vector<8x16xf32>
    %89 = arith.cmpf ogt, %87, %88 : vector<8x16xf32>
    %cst_52 = arith.constant 0.000000e+00 : f32
    %90 = vector.broadcast %cst_52 : f32 to vector<8x16xf32>
    %91 = arith.minimumf %87, %90 : vector<8x16xf32>
    %92 = math.exp %91 : vector<8x16xf32>
    %cst_53 = arith.constant 1.000000e+00 : f32
    %93 = vector.broadcast %cst_53 : f32 to vector<8x16xf32>
    %94 = arith.subf %92, %93 : vector<8x16xf32>
    %95 = arith.select %89, %87, %94 : vector<8x16xi1>, vector<8x16xf32>
    %c0_54 = arith.constant 0 : index
    %c0_55 = arith.constant 0 : index
    %96 = vector.load %arg6[%c0_54, %c0_55] : memref<80x16xbf16, #tpu.memory_space<vmem>>, vector<80x16xbf16>
    %cst_56 = arith.constant dense<0.000000e+00> : vector<80x32xf32>
    %97 = tpu.matmul %96, %65, %cst_56 {dimension_numbers = #tpu.dot_dimension_numbers<[1], [0], [0], [1], [0, 0, 1, 1], [], []>} : vector<80x16xbf16>, vector<16x32xbf16>, vector<80x32xf32> -> vector<80x32xf32>
    %98 = arith.truncf %97 : vector<80x32xf32> to vector<80x32xbf16>
    %cst_57 = arith.constant 0.000000e+00 : f32
    %99 = vector.broadcast %cst_57 : f32 to vector<16x256xf32>
    %100 = vector.extract_strided_slice %98 {offsets = [0, 0], sizes = [16, 32], strides = [1, 1]} : vector<80x32xbf16> to vector<16x32xbf16>
    %c0_58 = arith.constant 0 : index
    %c0_59 = arith.constant 0 : index
    %c0_60 = arith.constant 0 : index
    %101 = vector.load %arg7[%c0_58, %c0_59, %c0_60] : memref<5x32x256xbf16, #tpu.memory_space<vmem>>, vector<1x32x256xbf16>
    %102 = vector.shape_cast %101 : vector<1x32x256xbf16> to vector<32x256xbf16>
    %cst_61 = arith.constant dense<0.000000e+00> : vector<16x256xf32>
    %103 = tpu.matmul %100, %102, %cst_61 {dimension_numbers = #tpu.dot_dimension_numbers<[1], [0], [0], [1], [0, 0, 1, 1], [], []>} : vector<16x32xbf16>, vector<32x256xbf16>, vector<16x256xf32> -> vector<16x256xf32>
    %104 = arith.addf %99, %103 : vector<16x256xf32>
    %105 = vector.extract_strided_slice %98 {offsets = [16, 0], sizes = [16, 32], strides = [1, 1]} : vector<80x32xbf16> to vector<16x32xbf16>
    %c1_62 = arith.constant 1 : index
    %c0_63 = arith.constant 0 : index
    %c0_64 = arith.constant 0 : index
    %106 = vector.load %arg7[%c1_62, %c0_63, %c0_64] : memref<5x32x256xbf16, #tpu.memory_space<vmem>>, vector<1x32x256xbf16>
    %107 = vector.shape_cast %106 : vector<1x32x256xbf16> to vector<32x256xbf16>
    %cst_65 = arith.constant dense<0.000000e+00> : vector<16x256xf32>
    %108 = tpu.matmul %105, %107, %cst_65 {dimension_numbers = #tpu.dot_dimension_numbers<[1], [0], [0], [1], [0, 0, 1, 1], [], []>} : vector<16x32xbf16>, vector<32x256xbf16>, vector<16x256xf32> -> vector<16x256xf32>
    %109 = arith.addf %104, %108 : vector<16x256xf32>
    %110 = vector.extract_strided_slice %98 {offsets = [32, 0], sizes = [16, 32], strides = [1, 1]} : vector<80x32xbf16> to vector<16x32xbf16>
    %c2_66 = arith.constant 2 : index
    %c0_67 = arith.constant 0 : index
    %c0_68 = arith.constant 0 : index
    %111 = vector.load %arg7[%c2_66, %c0_67, %c0_68] : memref<5x32x256xbf16, #tpu.memory_space<vmem>>, vector<1x32x256xbf16>
    %112 = vector.shape_cast %111 : vector<1x32x256xbf16> to vector<32x256xbf16>
    %cst_69 = arith.constant dense<0.000000e+00> : vector<16x256xf32>
    %113 = tpu.matmul %110, %112, %cst_69 {dimension_numbers = #tpu.dot_dimension_numbers<[1], [0], [0], [1], [0, 0, 1, 1], [], []>} : vector<16x32xbf16>, vector<32x256xbf16>, vector<16x256xf32> -> vector<16x256xf32>
    %114 = arith.addf %109, %113 : vector<16x256xf32>
    %115 = vector.extract_strided_slice %98 {offsets = [48, 0], sizes = [16, 32], strides = [1, 1]} : vector<80x32xbf16> to vector<16x32xbf16>
    %c3_70 = arith.constant 3 : index
    %c0_71 = arith.constant 0 : index
    %c0_72 = arith.constant 0 : index
    %116 = vector.load %arg7[%c3_70, %c0_71, %c0_72] : memref<5x32x256xbf16, #tpu.memory_space<vmem>>, vector<1x32x256xbf16>
    %117 = vector.shape_cast %116 : vector<1x32x256xbf16> to vector<32x256xbf16>
    %cst_73 = arith.constant dense<0.000000e+00> : vector<16x256xf32>
    %118 = tpu.matmul %115, %117, %cst_73 {dimension_numbers = #tpu.dot_dimension_numbers<[1], [0], [0], [1], [0, 0, 1, 1], [], []>} : vector<16x32xbf16>, vector<32x256xbf16>, vector<16x256xf32> -> vector<16x256xf32>
    %119 = arith.addf %114, %118 : vector<16x256xf32>
    %120 = vector.extract_strided_slice %98 {offsets = [64, 0], sizes = [16, 32], strides = [1, 1]} : vector<80x32xbf16> to vector<16x32xbf16>
    %c4_74 = arith.constant 4 : index
    %c0_75 = arith.constant 0 : index
    %c0_76 = arith.constant 0 : index
    %121 = vector.load %arg7[%c4_74, %c0_75, %c0_76] : memref<5x32x256xbf16, #tpu.memory_space<vmem>>, vector<1x32x256xbf16>
    %122 = vector.shape_cast %121 : vector<1x32x256xbf16> to vector<32x256xbf16>
    %cst_77 = arith.constant dense<0.000000e+00> : vector<16x256xf32>
    %123 = tpu.matmul %120, %122, %cst_77 {dimension_numbers = #tpu.dot_dimension_numbers<[1], [0], [0], [1], [0, 0, 1, 1], [], []>} : vector<16x32xbf16>, vector<32x256xbf16>, vector<16x256xf32> -> vector<16x256xf32>
    %124 = arith.addf %119, %123 : vector<16x256xf32>
    %125 = vector.broadcast %8 : vector<1x256xf32> to vector<16x256xf32>
    %126 = arith.addf %124, %125 : vector<16x256xf32>
    %cst_78 = arith.constant 0.000000e+00 : f32
    %127 = vector.broadcast %cst_78 : f32 to vector<16x256xf32>
    %128 = arith.cmpf ogt, %126, %127 : vector<16x256xf32>
    %cst_79 = arith.constant 0.000000e+00 : f32
    %129 = vector.broadcast %cst_79 : f32 to vector<16x256xf32>
    %130 = arith.minimumf %126, %129 : vector<16x256xf32>
    %131 = math.exp %130 : vector<16x256xf32>
    %cst_80 = arith.constant 1.000000e+00 : f32
    %132 = vector.broadcast %cst_80 : f32 to vector<16x256xf32>
    %133 = arith.subf %131, %132 : vector<16x256xf32>
    %134 = arith.select %128, %126, %133 : vector<16x256xi1>, vector<16x256xf32>
    %135 = arith.truncf %95 : vector<8x16xf32> to vector<8x16xbf16>
    %c0_81 = arith.constant 0 : index
    %c0_82 = arith.constant 0 : index
    %136 = vector.load %arg8[%c0_81, %c0_82] : memref<48x8xbf16, #tpu.memory_space<vmem>>, vector<48x8xbf16>
    %cst_83 = arith.constant dense<0.000000e+00> : vector<48x16xf32>
    %137 = tpu.matmul %136, %135, %cst_83 {dimension_numbers = #tpu.dot_dimension_numbers<[1], [0], [0], [1], [0, 0, 1, 1], [], []>} : vector<48x8xbf16>, vector<8x16xbf16>, vector<48x16xf32> -> vector<48x16xf32>
    %138 = arith.truncf %137 : vector<48x16xf32> to vector<48x16xbf16>
    %cst_84 = arith.constant 0.000000e+00 : f32
    %139 = vector.broadcast %cst_84 : f32 to vector<16x128xf32>
    %140 = vector.extract_strided_slice %138 {offsets = [0, 0], sizes = [16, 16], strides = [1, 1]} : vector<48x16xbf16> to vector<16x16xbf16>
    %c0_85 = arith.constant 0 : index
    %c0_86 = arith.constant 0 : index
    %c0_87 = arith.constant 0 : index
    %141 = vector.load %arg9[%c0_85, %c0_86, %c0_87] : memref<3x16x128xbf16, #tpu.memory_space<vmem>>, vector<1x16x128xbf16>
    %142 = vector.shape_cast %141 : vector<1x16x128xbf16> to vector<16x128xbf16>
    %cst_88 = arith.constant dense<0.000000e+00> : vector<16x128xf32>
    %143 = tpu.matmul %140, %142, %cst_88 {dimension_numbers = #tpu.dot_dimension_numbers<[1], [0], [0], [1], [0, 0, 1, 1], [], []>} : vector<16x16xbf16>, vector<16x128xbf16>, vector<16x128xf32> -> vector<16x128xf32>
    %144 = arith.addf %139, %143 : vector<16x128xf32>
    %145 = vector.extract_strided_slice %138 {offsets = [16, 0], sizes = [16, 16], strides = [1, 1]} : vector<48x16xbf16> to vector<16x16xbf16>
    %c1_89 = arith.constant 1 : index
    %c0_90 = arith.constant 0 : index
    %c0_91 = arith.constant 0 : index
    %146 = vector.load %arg9[%c1_89, %c0_90, %c0_91] : memref<3x16x128xbf16, #tpu.memory_space<vmem>>, vector<1x16x128xbf16>
    %147 = vector.shape_cast %146 : vector<1x16x128xbf16> to vector<16x128xbf16>
    %cst_92 = arith.constant dense<0.000000e+00> : vector<16x128xf32>
    %148 = tpu.matmul %145, %147, %cst_92 {dimension_numbers = #tpu.dot_dimension_numbers<[1], [0], [0], [1], [0, 0, 1, 1], [], []>} : vector<16x16xbf16>, vector<16x128xbf16>, vector<16x128xf32> -> vector<16x128xf32>
    %149 = arith.addf %144, %148 : vector<16x128xf32>
    %150 = vector.extract_strided_slice %138 {offsets = [32, 0], sizes = [16, 16], strides = [1, 1]} : vector<48x16xbf16> to vector<16x16xbf16>
    %c2_93 = arith.constant 2 : index
    %c0_94 = arith.constant 0 : index
    %c0_95 = arith.constant 0 : index
    %151 = vector.load %arg9[%c2_93, %c0_94, %c0_95] : memref<3x16x128xbf16, #tpu.memory_space<vmem>>, vector<1x16x128xbf16>
    %152 = vector.shape_cast %151 : vector<1x16x128xbf16> to vector<16x128xbf16>
    %cst_96 = arith.constant dense<0.000000e+00> : vector<16x128xf32>
    %153 = tpu.matmul %150, %152, %cst_96 {dimension_numbers = #tpu.dot_dimension_numbers<[1], [0], [0], [1], [0, 0, 1, 1], [], []>} : vector<16x16xbf16>, vector<16x128xbf16>, vector<16x128xf32> -> vector<16x128xf32>
    %154 = arith.addf %149, %153 : vector<16x128xf32>
    %155 = vector.extract_strided_slice %154 {offsets = [0, 0], sizes = [8, 128], strides = [1, 1]} : vector<16x128xf32> to vector<8x128xf32>
    %156 = vector.broadcast %9 : vector<1x128xf32> to vector<8x128xf32>
    %157 = arith.addf %155, %156 : vector<8x128xf32>
    %cst_97 = arith.constant 0.000000e+00 : f32
    %158 = vector.broadcast %cst_97 : f32 to vector<8x128xf32>
    %159 = arith.cmpf ogt, %157, %158 : vector<8x128xf32>
    %cst_98 = arith.constant 0.000000e+00 : f32
    %160 = vector.broadcast %cst_98 : f32 to vector<8x128xf32>
    %161 = arith.minimumf %157, %160 : vector<8x128xf32>
    %162 = math.exp %161 : vector<8x128xf32>
    %cst_99 = arith.constant 1.000000e+00 : f32
    %163 = vector.broadcast %cst_99 : f32 to vector<8x128xf32>
    %164 = arith.subf %162, %163 : vector<8x128xf32>
    %165 = arith.select %159, %157, %164 : vector<8x128xi1>, vector<8x128xf32>
    %166 = arith.truncf %165 : vector<8x128xf32> to vector<8x128xbf16>
    %c0_100 = arith.constant 0 : index
    %c0_101 = arith.constant 0 : index
    %167 = vector.load %arg10[%c0_100, %c0_101] : memref<16x8xbf16, #tpu.memory_space<vmem>>, vector<16x8xbf16>
    %cst_102 = arith.constant dense<0.000000e+00> : vector<16x128xf32>
    %168 = tpu.matmul %167, %166, %cst_102 {dimension_numbers = #tpu.dot_dimension_numbers<[1], [0], [0], [1], [0, 0, 1, 1], [], []>} : vector<16x8xbf16>, vector<8x128xbf16>, vector<16x128xf32> -> vector<16x128xf32>
    %169 = arith.truncf %168 : vector<16x128xf32> to vector<16x128xbf16>
    %c0_103 = arith.constant 0 : index
    %c0_104 = arith.constant 0 : index
    %170 = vector.load %arg11[%c0_103, %c0_104] : memref<128x256xbf16, #tpu.memory_space<vmem>>, vector<128x256xbf16>
    %cst_105 = arith.constant dense<0.000000e+00> : vector<16x256xf32>
    %171 = tpu.matmul %169, %170, %cst_105 {dimension_numbers = #tpu.dot_dimension_numbers<[1], [0], [0], [1], [0, 0, 1, 1], [], []>} : vector<16x128xbf16>, vector<128x256xbf16>, vector<16x256xf32> -> vector<16x256xf32>
    %172 = arith.addf %134, %171 : vector<16x256xf32>
    %173 = arith.truncf %172 : vector<16x256xf32> to vector<16x256xbf16>
    %c0_106 = arith.constant 0 : index
    %c0_107 = arith.constant 0 : index
    %174 = vector.load %arg12[%c0_106, %c0_107] : memref<32x16xbf16, #tpu.memory_space<vmem>>, vector<32x16xbf16>
    %cst_108 = arith.constant dense<0.000000e+00> : vector<32x256xf32>
    %175 = tpu.matmul %174, %173, %cst_108 {dimension_numbers = #tpu.dot_dimension_numbers<[1], [0], [0], [1], [0, 0, 1, 1], [], []>} : vector<32x16xbf16>, vector<16x256xbf16>, vector<32x256xf32> -> vector<32x256xf32>
    %176 = arith.truncf %175 : vector<32x256xf32> to vector<32x256xbf16>
    %c0_109 = arith.constant 0 : index
    %c0_110 = arith.constant 0 : index
    %177 = vector.load %arg13[%c0_109, %c0_110] : memref<256x512xbf16, #tpu.memory_space<vmem>>, vector<256x512xbf16>
    %cst_111 = arith.constant dense<0.000000e+00> : vector<32x512xf32>
    %178 = tpu.matmul %176, %177, %cst_111 {dimension_numbers = #tpu.dot_dimension_numbers<[1], [0], [0], [1], [0, 0, 1, 1], [], []>} : vector<32x256xbf16>, vector<256x512xbf16>, vector<32x512xf32> -> vector<32x512xf32>
    %179 = arith.mulf %25, %178 : vector<32x512xf32>
    %180 = arith.addf %179, %14 : vector<32x512xf32>
    %c0_112 = arith.constant 0 : index
    %c0_113 = arith.constant 0 : index
    %181 = vector.load %arg17[%c0_112, %c0_113] : memref<32x512xf32, #tpu.memory_space<vmem>>, vector<32x512xf32>
    tpu.vector_store %arg17[%c0_112, %c0_113], %180 {strides = array<i32>} : memref<32x512xf32, #tpu.memory_space<vmem>>, vector<32x512xf32>,
    return
  }
  func.func @transform_0(%arg0: i32) -> (i32, i32) {
    %c0_i32 = arith.constant 0 : i32
    %c0_i32_0 = arith.constant 0 : i32
    return %arg0, %c0_i32 : i32, i32
  }
  func.func @transform_1(%arg0: i32) -> (i32, i32) {
    %c0_i32 = arith.constant 0 : i32
    %c0_i32_0 = arith.constant 0 : i32
    %c0_i32_1 = arith.constant 0 : i32
    return %c0_i32, %c0_i32_0 : i32, i32
  }
  func.func @transform_2(%arg0: i32) -> (i32, i32, i32) {
    %c0_i32 = arith.constant 0 : i32
    %c0_i32_0 = arith.constant 0 : i32
    %c0_i32_1 = arith.constant 0 : i32
    %c0_i32_2 = arith.constant 0 : i32
    return %c0_i32, %c0_i32_0, %c0_i32_1 : i32, i32, i32
  }
  func.func @transform_3(%arg0: i32) -> (i32, i32) {
    %c0_i32 = arith.constant 0 : i32
    %c0_i32_0 = arith.constant 0 : i32
    %c0_i32_1 = arith.constant 0 : i32
    return %c0_i32, %c0_i32_0 : i32, i32
  }
  func.func @transform_4(%arg0: i32) -> (i32, i32, i32) {
    %c0_i32 = arith.constant 0 : i32
    %c0_i32_0 = arith.constant 0 : i32
    %c0_i32_1 = arith.constant 0 : i32
    %c0_i32_2 = arith.constant 0 : i32
    return %c0_i32, %c0_i32_0, %c0_i32_1 : i32, i32, i32
  }
  func.func @transform_5(%arg0: i32) -> (i32, i32) {
    %c0_i32 = arith.constant 0 : i32
    %c0_i32_0 = arith.constant 0 : i32
    %c0_i32_1 = arith.constant 0 : i32
    return %c0_i32, %c0_i32_0 : i32, i32
  }
  func.func @transform_6(%arg0: i32) -> (i32, i32, i32) {
    %c0_i32 = arith.constant 0 : i32
    %c0_i32_0 = arith.constant 0 : i32
    %c0_i32_1 = arith.constant 0 : i32
    %c0_i32_2 = arith.constant 0 : i32
    return %c0_i32, %c0_i32_0, %c0_i32_1 : i32, i32, i32
  }
  func.func @transform_7(%arg0: i32) -> (i32, i32) {
    %c0_i32 = arith.constant 0 : i32
    %c0_i32_0 = arith.constant 0 : i32
    %c0_i32_1 = arith.constant 0 : i32
    return %c0_i32, %c0_i32_0 : i32, i32
  }
  func.func @transform_8(%arg0: i32) -> (i32, i32, i32) {
    %c0_i32 = arith.constant 0 : i32
    %c0_i32_0 = arith.constant 0 : i32
    %c0_i32_1 = arith.constant 0 : i32
    %c0_i32_2 = arith.constant 0 : i32
    return %c0_i32, %c0_i32_0, %c0_i32_1 : i32, i32, i32
  }
  func.func @transform_9(%arg0: i32) -> (i32, i32) {
    %c0_i32 = arith.constant 0 : i32
    %c0_i32_0 = arith.constant 0 : i32
    %c0_i32_1 = arith.constant 0 : i32
    return %c0_i32, %c0_i32_0 : i32, i32
  }
  func.func @transform_10(%arg0: i32) -> (i32, i32) {
    %c0_i32 = arith.constant 0 : i32
    %c0_i32_0 = arith.constant 0 : i32
    %c0_i32_1 = arith.constant 0 : i32
    return %c0_i32, %c0_i32_0 : i32, i32
  }
  func.func @transform_11(%arg0: i32) -> (i32, i32) {
    %c0_i32 = arith.constant 0 : i32
    %c0_i32_0 = arith.constant 0 : i32
    %c0_i32_1 = arith.constant 0 : i32
    return %c0_i32, %c0_i32_0 : i32, i32
  }
  func.func @transform_12(%arg0: i32) -> (i32, i32) {
    %c0_i32 = arith.constant 0 : i32
    %c0_i32_0 = arith.constant 0 : i32
    %c0_i32_1 = arith.constant 0 : i32
    return %c0_i32, %c0_i32_0 : i32, i32
  }
  func.func @transform_13(%arg0: i32) -> (i32, i32) {
    %c0_i32 = arith.constant 0 : i32
    %c0_i32_0 = arith.constant 0 : i32
    %c0_i32_1 = arith.constant 0 : i32
    return %c0_i32, %c0_i32_0 : i32, i32
  }
  func.func @transform_14(%arg0: i32) -> (i32, i32) {
    %c0_i32 = arith.constant 0 : i32
    %c0_i32_0 = arith.constant 0 : i32
    %c0_i32_1 = arith.constant 0 : i32
    return %c0_i32, %c0_i32_0 : i32, i32
  }
  func.func @transform_15(%arg0: i32) -> (i32, i32) {
    %c0_i32 = arith.constant 0 : i32
    %c0_i32_0 = arith.constant 0 : i32
    %c0_i32_1 = arith.constant 0 : i32
    return %c0_i32, %c0_i32_0 : i32, i32
  }
  func.func @transform_16(%arg0: i32) -> (i32, i32) {
    %c0_i32 = arith.constant 0 : i32
    %c0_i32_0 = arith.constant 0 : i32
    return %arg0, %c0_i32 : i32, i32
  }
}

</mosaic_0001>

<bundles_post_ra>
// kernel: tpu_custom_call.1
= control target key start
LH: loop header
LB: loop body
LE: loop exit
PB: predicated region body
PF: predicated region fallthrough
CT: control target
= control target key end

     0   :  { %s5017_s0 = inlined_call_operand.hbm [shape: f32[32,64], index: 0, kind: input, shape index: {}]   ;;  %s5018_s1 = inlined_call_operand.vmem [shape: bf16[80,32], index: 1, kind: input, shape index: {}]   ;;  %s5019_s2 = inlined_call_operand.vmem [shape: bf16[5,64,32], index: 2, kind: input, shape index: {}]   ;;  %s5020_s3 = inlined_call_operand.vmem [shape: bf16[48,16], index: 3, kind: input, shape index: {}]   ;;  %s5021_s4 = inlined_call_operand.vmem [shape: bf16[3,32,16], index: 4, kind: input, shape index: {}]   ;;  %s5022_s5 = inlined_call_operand.vmem [shape: bf16[80,16], index: 5, kind: input, shape index: {}]   ;;  %s5023_s6 = inlined_call_operand.hbm [shape: bf16[5,32,256], index: 6, kind: input, shape index: {}]   ;;  %s5024_s7 = inlined_call_operand.vmem [shape: bf16[48,8], index: 7, kind: input, shape index: {}]   ;;  %s5025_s8 = inlined_call_operand.hbm [shape: bf16[3,16,128], index: 8, kind: input, shape index: {}]   ;;  %s5026_s9 = inlined_call_operand.vmem [shape: bf16[16,8], index: 9, kind: input, shape index: {}]   ;;  %s5027_s10 = inlined_call_operand.hbm [shape: bf16[128,256], index: 10, kind: input, shape index: {}]   ;;  %s5028_s11 = inlined_call_operand.vmem [shape: bf16[32,16], index: 11, kind: input, shape index: {}]   ;;  %s5029_s12 = inlined_call_operand.vmem [shape: bf16[256,512], index: 12, kind: input, shape index: {}]   ;;  %s5030_s13 = inlined_call_operand.hbm [shape: bf16[64,1024], index: 13, kind: input, shape index: {}]   ;;  %s5031_s14 = inlined_call_operand.vmem [shape: bf16[32,32], index: 14, kind: input, shape index: {}]   ;;  %s5032_s15 = inlined_call_operand.hbm [shape: f32[5,512], index: 15, kind: input, shape index: {}]   ;;  %s5033_s16 = inlined_call_operand.hbm [shape: f32[32,512], index: 16, kind: output, shape index: {}]  }
   0x1   :  { %5034 = sst [smem:[#allocation19_spill]] %s5017_s0 }
   0x2   :  { %21 = vsyncpa [#allocation3], 0 }
   0x3   :  { %22 = vsyncpa [#allocation6], 0 }
   0x4   :  { %23 = vsyncpa [#allocation9], 0 }
   0x5   :  { %24 = vsyncpa [#allocation12], 0 }
   0x6   :  { %25 = vsyncpa [#allocation4], 0  ;;  %s4159_s21 = smov [#allocation5]   ;;  %s4160_s23 = smov [#allocation8]  }
   0x7   :  { %s53_s22 = sshll.u32 %s4159_s21, 4  ;;  %s81_s24 = sshll.u32 %s4160_s23, 4  ;;  %s54_s22 = int_to_ptr.vmem [resolvable:$true] %s53_s22  ;;  %s82_s24 = int_to_ptr.vmem [resolvable:$true] %s81_s24 }
   0x8   :  { %s4017_s25 = scalar_lea.vmem %s54_s22, 2560  ;;  %p4022_p1 = scmp.lt.s32.totalorder %s54_s22, %s54_s22 }
   0x9   :  { %p4018_p0 = scmp.ne.s32.totalorder %s54_s22, %s4017_s25  ;;  %p4023_p2 = scmp.lt.s32.totalorder %s4017_s25, %s4017_s25 }
   0xb   :  { %p4024_p3 = por %p4023_p2, %p4022_p1 }
   0xd   :  { %p4025_p4 = pnand %p4024_p3, %p4018_p0 }
   0xf   :  { %4028 = shalt.err (!%p4025_p4)
}
  0x10   :  { %s4161_s26 = smov 128   ;;  %s4162_s27 = smov 8  }
  0x11   :  { %59 = dma.hbm_to_vmem [thread:$0]  %s5023_s6, 2560, %s54_s22, [#allocation6], %s4161_s26, %s4161_s26, %s4162_s27  }
  0x12   :  { %s4037_s30 = scalar_lea.vmem %s82_s24, 2048  ;;  %p4042_p6 = scmp.lt.s32.totalorder %s82_s24, %s82_s24 }
  0x13   :  { %p4038_p5 = scmp.ne.s32.totalorder %s82_s24, %s4037_s30  ;;  %p4043_p7 = scmp.lt.s32.totalorder %s4037_s30, %s4037_s30 }
  0x15   :  { %p4044_p8 = por %p4043_p7, %p4042_p6 }
  0x17   :  { %p4045_p9 = pnand %p4044_p8, %p4038_p5 }
  0x19   :  { %4048 = shalt.err (!%p4045_p9)
}
  0x1a   :  { %87 = dma.hbm_to_vmem [thread:$0]  %s5027_s10, 2048, %s82_s24, [#allocation9], %s4161_s26, %s4161_s26, %s4162_s27  }
  0x1b   :  { %s4163_s18 = smov [#allocation2]   ;;  %s4164_s20 = smov [#allocation7]  }
  0x1c   :  { %s31_s19 = sshll.u32 %s4163_s18, 4  ;;  %s67_s21 = sshll.u32 %s4164_s20, 4  ;;  %s32_s19 = int_to_ptr.vmem [resolvable:$true] %s31_s19  ;;  %s68_s21 = int_to_ptr.vmem [resolvable:$true] %s67_s21 }
  0x1d   :  { %s4057_s23 = scalar_lea.vmem %s32_s19, 512  ;;  %p4062_p11 = scmp.lt.s32.totalorder %s32_s19, %s32_s19 }
  0x1e   :  { %p4058_p10 = scmp.ne.s32.totalorder %s32_s19, %s4057_s23  ;;  %p4063_p12 = scmp.lt.s32.totalorder %s4057_s23, %s4057_s23 }
  0x20   :  { %p4064_p13 = por %p4063_p12, %p4062_p11 }
  0x22   :  { %p4065_p0 = pnand %p4064_p13, %p4058_p10 }
  0x24   :  { %4068 = shalt.err (!%p4065_p0)
}
  0x25   :  { %s5035_s25 = sld [smem:[#allocation19_spill]]  ;;  %s4077_s28 = scalar_lea.vmem %s68_s21, 384 }
  0x26   :  { %p4078_p1 = scmp.ne.s32.totalorder %s68_s21, %s4077_s28  ;;  %p4082_p2 = scmp.lt.s32.totalorder %s68_s21, %s68_s21 }
  0x27   :  { %p4083_p3 = scmp.lt.s32.totalorder %s4077_s28, %s4077_s28 }
  0x29   :  { %p4084_p4 = por %p4083_p3, %p4082_p2 }
  0x2b   :  { %37 = dma.hbm_to_vmem [thread:$0]  %s5035_s25, 512, %s32_s19, [#allocation3], %s4161_s26, %s4161_s26, %s4162_s27  }
  0x2c   :  { %p4085_p5 = pnand %p4084_p4, %p4078_p1 }
  0x2e   :  { %4088 = shalt.err (!%p4085_p5)
}
  0x2f   :  { %s4165_s10 = smov 64   ;;  %s4166_s24 = smov 4  }
  0x30   :  { %73 = dma.hbm_to_vmem [thread:$0]  %s5025_s8, 384, %s68_s21, [#allocation6], %s4165_s10, %s4165_s10, %s4166_s24  }
  0x31   :  { %s4167_s0 = smov [#allocation10]  }
  0x32   :  { %s97_s17 = sshll.u32 %s4167_s0, 4  ;;  %s98_s17 = int_to_ptr.vmem [resolvable:$true] %s97_s17 }
  0x33   :  { %s4097_s18 = scalar_lea.vmem %s98_s17, 4096  ;;  %p4102_p7 = scmp.lt.s32.totalorder %s98_s17, %s98_s17 }
  0x34   :  { %p4098_p6 = scmp.ne.s32.totalorder %s98_s17, %s4097_s18  ;;  %p4103_p8 = scmp.lt.s32.totalorder %s4097_s18, %s4097_s18 }
  0x36   :  { %p4104_p9 = por %p4103_p8, %p4102_p7 }
  0x38   :  { %p4105_p10 = pnand %p4104_p9, %p4098_p6 }
  0x3a   :  { %4108 = shalt.err (!%p4105_p10)
}
  0x3b   :  { %s4168_s26 = smov 512   ;;  %s4169_s27 = smov 32  }
  0x3c   :  { %103 = dma.hbm_to_vmem [thread:$0]  %s5030_s13, 4096, %s98_s17, [#allocation9], %s4168_s26, %s4168_s26, %s4169_s27  }
  0x3d   :  { %s4170_s8 = smov [#allocation11]  }
  0x3e   :  { %s112_s21 = sshll.u32 %s4170_s8, 4  ;;  %s113_s21 = int_to_ptr.vmem [resolvable:$true] %s112_s21 }
  0x3f   :  { %s4117_s23 = scalar_lea.vmem %s113_s21, 512  ;;  %p4122_p12 = scmp.lt.s32.totalorder %s113_s21, %s113_s21 }
  0x40   :  { %p4118_p11 = scmp.ne.s32.totalorder %s113_s21, %s4117_s23  ;;  %p4123_p13 = scmp.lt.s32.totalorder %s4117_s23, %s4117_s23 }
  0x42   :  { %p4124_p0 = por %p4123_p13, %p4122_p12 }
  0x44   :  { %p4125_p1 = pnand %p4124_p0, %p4118_p11 }
  0x46   :  { %4128 = shalt.err (!%p4125_p1)
}
  0x47   :  { %115 = dma.hbm_to_vmem [thread:$0]  %s5032_s15, 512, %s113_s21, [#allocation12]  }
  0x48   :  { %4149 = dma.done.wait [#allocation3], 512  }
  0x49   :  { %4150 = vsyncadd [#allocation3], 4294966784 }
  0x4a   :  { %4151 = dma.done.wait [#allocation6], 2944  }
  0x4b   :  { %4152 = vsyncadd [#allocation6], 4294964352 }
  0x4c   :  { %4153 = dma.done.wait [#allocation9], 6144  }
  0x4d   :  { %4154 = vsyncadd [#allocation9], 4294961152 }
  0x4e   :  { %4155 = dma.done.wait [#allocation12], 512  }
  0x4f   :  { %4156 = vsyncadd [#allocation12], 4294966784  ;;  %v137_v0 = vld [vmem:[#allocation2 + $0x10] sm:$0xff]  ;;  %v138_v1 = vld [vmem:[#allocation2 + $0x18] sm:$0xff]  ;;  %vm191_vm0 = vcmask 261120   ;;  %v4171_v43 = vmov 0  }
  0x50   :  { %v135_v2 = vld [vmem:[#allocation2] sm:$0xff]  ;;  %v4281_v3 = vpack.c.bf16 %v138_v1, %v137_v0  ;;  %v136_v4 = vld [vmem:[#allocation2 + $0x8] sm:$0xff]  ;;  %v168_v10 = vld [vmem:[#allocation10 + $0xd8] sm:$0xff]  ;;  %368 = vmatprep.mubr.bf16.mxu1 %v4171_v43  ;;  %vm329_vm1 = vcmask 523264   ;;  %vm4173_vm2 = vmmov 0   ;;  %vm1304_vm5 = vcmask 130048  }
  0x51   :  { %v4283_v5 = vpack.c.bf16 %v136_v4, %v135_v2  ;;  %v3760_v6 = vld [vmem:[%s5031_s14] sm:$0xff]   ;;  %v167_v7 = vld [vmem:[#allocation10 + $0xd0] sm:$0xff]  ;;  %v172_v11 = vld [vmem:[#allocation10 + $0xf8] sm:$0xff]  ;;  %vm2127_vm7 = vcmask 1043456   ;;  %vm2117_vm8 = vcmask 64512  }
  0x52   :  { %3552 = vmatprep.subr.bf16.mxu0 %v4281_v3  ;;  %v171_v8 = vld [vmem:[#allocation10 + $0xf0] sm:$0xff]  ;;  %3556 = vmatprep.mubr.msk.bf16.mxu0 %vm191_vm0, %v3760_v6  ;;  %v3213_v15 = vcombine.high %v168_v10, %v172_v11  ;;  %v160_v17 = vld [vmem:[#allocation10 + $0x98] sm:$0xff]  ;;  %v3212_v21 = vcombine.low %v168_v10, %v172_v11  ;;  %v165_v40 = vld [vmem:[#allocation10 + $0xc0] sm:$0xff] }
  0x53   :  { %3553 = vmatpush3.bf16.msra.mxu0 %v4281_v3  ;;  %v3211_v9 = vcombine.high %v167_v7, %v171_v8  ;;  %v3210_v12 = vcombine.low %v167_v7, %v171_v8  ;;  %v159_v13 = vld [vmem:[#allocation10 + $0x90] sm:$0xff]  ;;  %v164_v18 = vld [vmem:[#allocation10 + $0xb8] sm:$0xff]  ;;  %v169_v41 = vld [vmem:[#allocation10 + $0xe0] sm:$0xff] }
  0x54   :  { %3554 = vmatprep.subr.bf16.mxu0 %v4283_v5  ;;  %v3761_v14 = vld [vmem:[%s5031_s14 + $0x8] sm:$0xff]   ;;  %v3209_v22 = vcombine.high %v160_v17, %v164_v18  ;;  %v3208_v23 = vcombine.low %v160_v17, %v164_v18  ;;  %v152_v26 = vld [vmem:[#allocation10 + $0x58] sm:$0xff]  ;;  %v3231_v42 = vcombine.high %v165_v40, %v169_v41  ;;  %v3230_v44 = vcombine.low %v165_v40, %v169_v41  ;;  %v166_v45 = vld [vmem:[#allocation10 + $0xc8] sm:$0xff] }
  0x55   :  { %v163_v16 = vld [vmem:[#allocation10 + $0xb0] sm:$0xff]  ;;  %344 = vmatprep.subr.bf16.mxu1 %v3211_v9  ;;  %v156_v28 = vld [vmem:[#allocation10 + $0x78] sm:$0xff]  ;;  %v170_v46 = vld [vmem:[#allocation10 + $0xe8] sm:$0xff] }
  0x56   :  { %v3207_v19 = vcombine.high %v159_v13, %v163_v16  ;;  %345 = vmatpush1.bf16.msra.mxu1 %v3210_v12  ;;  %v3206_v20 = vcombine.low %v159_v13, %v163_v16  ;;  %v151_v24 = vld [vmem:[#allocation10 + $0x50] sm:$0xff]  ;;  %v3204_v29 = vcombine.low %v152_v26, %v156_v28  ;;  %v3205_v30 = vcombine.high %v152_v26, %v156_v28  ;;  %v144_v34 = vld [vmem:[#allocation10 + $0x18] sm:$0xff]  ;;  %v157_v52 = vld [vmem:[#allocation10 + $0x80] sm:$0xff] }
  0x57   :  { %3555 = vmatpush3.bf16.msra.mxu0 %v4283_v5  ;;  %v155_v25 = vld [vmem:[#allocation10 + $0x70] sm:$0xff]  ;;  %v148_v36 = vld [vmem:[#allocation10 + $0x38] sm:$0xff]  ;;  %v3232_v47 = vcombine.low %v166_v45, %v170_v46  ;;  %v3233_v48 = vcombine.high %v166_v45, %v170_v46  ;;  %v161_v53 = vld [vmem:[#allocation10 + $0xa0] sm:$0xff]  ;;  %v4172_v13 = vmov 0.0  }
  0x58   :  { %346 = vmatprep.subr.bf16.mxu1 %v3207_v19  ;;  %397 = vmatprep.subr.bf16.mxu0 %v3213_v15  ;;  %v3203_v27 = vcombine.high %v151_v24, %v155_v25  ;;  %v3202_v31 = vcombine.low %v151_v24, %v155_v25  ;;  %v143_v32 = vld [vmem:[#allocation10 + $0x10] sm:$0xff]  ;;  %v3200_v37 = vcombine.low %v144_v34, %v148_v36  ;;  %v158_v55 = vld [vmem:[#allocation10 + $0x88] sm:$0xff]  ;;  %v149_v59 = vld [vmem:[#allocation10 + $0x40] sm:$0xff] }
  0x59   :  { %v147_v33 = vld [vmem:[#allocation10 + $0x30] sm:$0xff]  ;;  %v3201_v38 = vcombine.high %v144_v34, %v148_v36  ;;  %v162_v56 = vld [vmem:[#allocation10 + $0xa8] sm:$0xff]  ;;  %v3227_v58 = vcombine.high %v157_v52, %v161_v53  ;;  %v153_v60 = vld [vmem:[#allocation10 + $0x60] sm:$0xff]  ;;  %v3226_v62 = vcombine.low %v157_v52, %v161_v53 }
  0x5a   :  { %3557 = vmatmul.mubr.msk.bf16.vlgmr.msra.gmra.mxu0 %vm191_vm0, %v3761_v14  ;;  %347 = vmatpush1.bf16.msra.mxu1 %v3206_v20  ;;  %v3199_v35 = vcombine.high %v143_v32, %v147_v33  ;;  %v3198_v39 = vcombine.low %v143_v32, %v147_v33  ;;  %v3229_v61 = vcombine.high %v158_v55, %v162_v56  ;;  %v141_v0 = vld [vmem:[#allocation10] sm:$0xff]  ;;  %v150_v4 = vld [vmem:[#allocation10 + $0x48] sm:$0xff]  ;;  %v3763_v15 = vld [vmem:[%s5018_s1 + $0x8] sm:$0xff]  }
  0x5b   :  { %398 = vmatpush1.bf16.msra.mxu0 %v3212_v21  ;;  %348 = vmatprep.subr.bf16.mxu1 %v3203_v27  ;;  %v3223_v63 = vcombine.high %v149_v59, %v153_v60  ;;  %v145_v1 = vld [vmem:[#allocation10 + $0x20] sm:$0xff]  ;;  %v3228_v2 = vcombine.low %v158_v55, %v162_v56  ;;  %v154_v6 = vld [vmem:[#allocation10 + $0x68] sm:$0xff]  ;;  %v3222_v7 = vcombine.low %v149_v59, %v153_v60  ;;  %v3764_v16 = vld [vmem:[%s5018_s1 + $0x10] sm:$0xff]  }
  0x5c   :  { %399 = vmatprep.subr.bf16.mxu0 %v3209_v22  ;;  %421 = vmatprep.mubr.bf16.mxu0 %v4171_v43  ;;  %v3219_v9 = vcombine.high %v141_v0, %v145_v1  ;;  %v3225_v10 = vcombine.high %v150_v4, %v154_v6  ;;  %v3224_v11 = vcombine.low %v150_v4, %v154_v6  ;;  %v3762_v14 = vld [vmem:[%s5018_s1] sm:$0xff]   ;;  %v3765_v17 = vld [vmem:[%s5018_s1 + $0x18] sm:$0xff]   ;;  %v3768_v24 = vld [vmem:[%s5019_s2 + $0x30] sm:$0xff]  }
  0x5d   :  { %v3218_v12 = vcombine.low %v141_v0, %v145_v1  ;;  %v3766_v18 = vld [vmem:[%s5018_s1 + $0x20] sm:$0xff]   ;;  %v3775_v25 = vld [vmem:[%s5019_s2 + $0x78] sm:$0xff]   ;;  %v3777_v26 = vld [vmem:[%s5019_s2 + $0x70] sm:$0xff]  }
  0x5e   :  { %349 = vmatpush1.bf16.msra.mxu1 %v3202_v31  ;;  %v142_v19 = vld [vmem:[#allocation10 + $0x8] sm:$0xff]  ;;  %v3779_v27 = vld [vmem:[%s5019_s2 + $0x68] sm:$0xff]   ;;  %v3771_v53 = vld [vmem:[%s5019_s2 + $0x18] sm:$0xff]  }
  0x5f   :  { %400 = vmatpush1.bf16.msra.mxu0 %v3208_v23  ;;  %350 = vmatprep.subr.bf16.mxu1 %v3199_v35  ;;  %v146_v20 = vld [vmem:[#allocation10 + $0x28] sm:$0xff]  ;;  %v3767_v23 = vld [vmem:[%s5019_s2 + $0x38] sm:$0xff]   ;;  %v3772_v56 = vld [vmem:[%s5019_s2 + $0x10] sm:$0xff]  }
  0x60   :  { %401 = vmatprep.subr.bf16.mxu0 %v3205_v30  ;;  %v3221_v21 = vcombine.high %v142_v19, %v146_v20  ;;  %v3220_v22 = vcombine.low %v142_v19, %v146_v20  ;;  %v3781_v28 = vld [vmem:[%s5019_s2 + $0x60] sm:$0xff]   ;;  %v3773_v59 = vld [vmem:[%s5019_s2 + $0x8] sm:$0xff]   ;;  %v3776_v1 = vld [vmem:[%s5019_s2 + $0x58] sm:$0xff]  }
  0x61   :  { %v3785_v19 = vld [vmem:[%s5019_s2 + $0x88] sm:$0xff]   ;;  %v3786_v20 = vld [vmem:[%s5019_s2 + $0x80] sm:$0xff]  }
  0x62   :  { %351 = vmatpush1.bf16.msra.mxu1 %v3198_v39 }
  0x63   :  { %402 = vmatpush1.bf16.msra.mxu0 %v3204_v29  ;;  %552 = vmatprep.subr.bf16.mxu1 %v3231_v42 }
  0x64   :  { %403 = vmatprep.subr.bf16.mxu0 %v3201_v38 }
  0x67   :  { %404 = vmatpush1.bf16.msra.mxu0 %v3200_v37 }
  0x68   :  { %605 = vmatprep.subr.bf16.mxu0 %v3233_v48 }
 0x11a   :  { %v3558_v49 = vpop.f32.mrf.mxu0 }
 0x11c   :  { %v232_v50 = vpop.f32.mrf.mxu0 }
 0x11e   :  { %v3559_v51 = vpop.f32.mrf.mxu0 }
 0x11f   :  { %v248_v8 = vpack.c.bf16 %v3559_v51, %v3558_v49 }
 0x120   :  { %v235_v54 = vpop.f32.mrf.mxu0 }
 0x121   :  { %v247_v57 = vpack.c.bf16 %v235_v54, %v232_v50 }
 0x123   :  { %3214 = vmatmul.mubr.msk.bf16.vlgmr.msra.gmra.mxu1 %vm329_vm1, %v247_v57  ;;  %3216 = vmatmul.mubr.msk.bf16.vlgmr.msra.gmra.mxu0 %vm329_vm1, %v247_v57 }
 0x124   :  { %553 = vmatpush1.bf16.msra.mxu1 %v3230_v44  ;;  %378 = vmatprep.mubr.bf16.mxu1 %v4171_v43 }
 0x125   :  { %554 = vmatprep.subr.bf16.mxu1 %v3227_v58  ;;  %431 = vmatprep.mubr.bf16.mxu0 %v4171_v43 }
 0x126   :  { %606 = vmatpush1.bf16.msra.mxu0 %v3232_v47 }
 0x127   :  { %607 = vmatprep.subr.bf16.mxu0 %v3229_v61 }
 0x128   :  { %555 = vmatpush1.bf16.msra.mxu1 %v3226_v62  ;;  %v3774_v62 = vld [vmem:[%s5019_s2] sm:$0xff]  }
 0x129   :  { %556 = vmatprep.subr.bf16.mxu1 %v3223_v63 }
 0x12a   :  { %608 = vmatpush1.bf16.msra.mxu0 %v3228_v2 }
 0x12b   :  { %3215 = vmatmul.mubr.msk.bf16.gmra.mxu1 %vm329_vm1, %v248_v8  ;;  %3217 = vmatmul.mubr.msk.bf16.gmra.mxu0 %vm329_vm1, %v248_v8  ;;  %v3778_v8 = vld [vmem:[%s5019_s2 + $0x50] sm:$0xff]  }
 0x12c   :  { %557 = vmatpush1.bf16.msra.mxu1 %v3222_v7  ;;  %576 = vmatprep.mubr.bf16.mxu1 %v4171_v43 }
 0x12d   :  { %558 = vmatprep.subr.bf16.mxu1 %v3219_v9  ;;  %609 = vmatprep.subr.bf16.mxu0 %v3225_v10 }
 0x12e   :  { %610 = vmatpush1.bf16.msra.mxu0 %v3224_v11  ;;  %629 = vmatprep.mubr.bf16.mxu0 %v4171_v43  ;;  %v3780_v11 = vld [vmem:[%s5019_s2 + $0x48] sm:$0xff]  }
 0x12f   :  { %611 = vmatprep.subr.bf16.mxu0 %v3221_v21 }
 0x130   :  { %559 = vmatpush1.bf16.msra.mxu1 %v3218_v12 }
 0x131   :  { %3560 = vmatprep.subr.bf16.mxu1 %v4172_v13 }
 0x132   :  { %612 = vmatpush1.bf16.msra.mxu0 %v3220_v22 }
 0x133   :  { %3234 = vmatmul.mubr.msk.bf16.vlgmr.msra.gmra.mxu1 %vm329_vm1, %v4283_v5  ;;  %3584 = vmatprep.subr.bf16.mxu0 %v4172_v13 }
 0x134   :  { %586 = vmatprep.mubr.bf16.mxu1 %v4171_v43  ;;  %3561 = vmatpush3.bf16.msra.mxu1 %v4281_v3 }
 0x135   :  { %3562 = vmatprep.subr.bf16.mxu1 %v4172_v13  ;;  %3236 = vmatmul.mubr.msk.bf16.vlgmr.msra.gmra.mxu0 %vm329_vm1, %v4283_v5 }
 0x136   :  { %639 = vmatprep.mubr.bf16.mxu0 %v4171_v43  ;;  %3585 = vmatpush3.bf16.msra.mxu0 %v3767_v23 }
 0x137   :  { %3586 = vmatprep.subr.bf16.mxu0 %v4172_v13 }
 0x138   :  { %3563 = vmatpush3.bf16.msra.mxu1 %v4283_v5  ;;  %v3770_v5 = vld [vmem:[%s5019_s2 + $0x20] sm:$0xff]  }
 0x139   :  { %3620 = vmatprep.subr.bf16.mxu1 %v4172_v13 }
 0x13a   :  { %3587 = vmatpush3.bf16.msra.mxu0 %v3768_v24 }
 0x13b   :  { %3235 = vmatmul.mubr.msk.bf16.gmra.mxu1 %vm329_vm1, %v4281_v3  ;;  %3588 = vmatprep.subr.bf16.mxu0 %v4172_v13 }
 0x13c   :  { %3564 = vmatprep.mubr.msk.bf16.mxu1 %vm4173_vm2, %v4172_v13 }
 0x13d   :  { %3237 = vmatmul.mubr.msk.bf16.gmra.mxu0 %vm329_vm1, %v4281_v3  ;;  %v3769_v3 = vld [vmem:[%s5019_s2 + $0x28] sm:$0xff]  }
 0x13e   :  { %3592 = vmatprep.mubr.msk.bf16.mxu0 %vm4173_vm2, %v4172_v13  ;;  %3589 = vmatpush3.bf16.msra.mxu0 %v3769_v3 }
 0x13f   :  { %3590 = vmatprep.subr.bf16.mxu0 %v4172_v13 }
 0x142   :  { %3591 = vmatpush3.bf16.msra.mxu0 %v3770_v5 }
 0x143   :  { %3565 = vmatmul.mubr.msk.bf16.vlgmr.msra.gmra.mxu1 %vm191_vm0, %v3762_v14  ;;  %3596 = vmatprep.subr.bf16.mxu0 %v4172_v13 }
 0x144   :  { %3568 = vmatprep.mubr.msk.bf16.mxu1 %vm4173_vm2, %v4172_v13  ;;  %3621 = vmatpush3.bf16.msra.mxu1 %v3775_v25 }
 0x145   :  { %3622 = vmatprep.subr.bf16.mxu1 %v4172_v13 }
 0x148   :  { %3623 = vmatpush3.bf16.msra.mxu1 %v3777_v26 }
 0x149   :  { %3624 = vmatprep.subr.bf16.mxu1 %v4172_v13 }
 0x14b   :  { %3569 = vmatmul.mubr.msk.bf16.gmra.mxu1 %vm191_vm0, %v3763_v15  ;;  %v3782_v15 = vld [vmem:[%s5019_s2 + $0x40] sm:$0xff]  }
 0x14c   :  { %3572 = vmatprep.mubr.msk.bf16.mxu1 %vm4173_vm2, %v4172_v13  ;;  %3625 = vmatpush3.bf16.msra.mxu1 %v3779_v27 }
 0x14d   :  { %3626 = vmatprep.subr.bf16.mxu1 %v4172_v13 }
 0x150   :  { %3627 = vmatpush3.bf16.msra.mxu1 %v3781_v28 }
 0x151   :  { %3742 = vmatprep.subr.bf16.mxu1 %v4172_v13 }
 0x153   :  { %3573 = vmatmul.mubr.msk.bf16.gmra.mxu1 %vm191_vm0, %v3764_v16  ;;  %v3783_v16 = vld [vmem:[%s5019_s2 + $0x98] sm:$0xff]  }
 0x154   :  { %3576 = vmatprep.mubr.msk.bf16.mxu1 %vm4173_vm2, %v4172_v13 }
 0x15b   :  { %3577 = vmatmul.mubr.msk.bf16.gmra.mxu1 %vm191_vm0, %v3765_v17 }
 0x15c   :  { %3580 = vmatprep.mubr.msk.bf16.mxu1 %vm4173_vm2, %v4172_v13 }
 0x163   :  { %3581 = vmatmul.mubr.msk.bf16.gmra.mxu1 %vm191_vm0, %v3766_v18  ;;  %v3784_v18 = vld [vmem:[%s5019_s2 + $0x90] sm:$0xff]  }
 0x164   :  { %3628 = vmatprep.mubr.msk.bf16.mxu1 %vm4173_vm2, %v4172_v13 }
 0x1e3   :  { %v4389_v29 = vpop.f32.mrf.mxu1  ;;  %v4484_v22 = vpop.f32.mrf.mxu0 }
 0x1e5   :  { %v4391_v30 = vpop.f32.mrf.mxu1  ;;  %v4486_v23 = vpop.f32.mrf.mxu0 }
 0x1e7   :  { %v4393_v31 = vpop.f32.mrf.mxu1  ;;  %v4488_v24 = vpop.f32.mrf.mxu0 }
 0x1e9   :  { %v4395_v32 = vpop.f32.mrf.mxu1  ;;  %v4490_v3 = vpop.f32.mrf.mxu0 }
 0x1eb   :  { %v4397_v33 = vpop.f32.mrf.mxu1  ;;  %v4492_v5 = vpop.f32.mrf.mxu0 }
 0x1ed   :  { %v4399_v34 = vpop.f32.mrf.mxu1  ;;  %v4494_v25 = vpop.f32.mrf.mxu0 }
 0x1ef   :  { %v4401_v35 = vpop.f32.mrf.mxu1  ;;  %v4496_v26 = vpop.f32.mrf.mxu0 }
 0x1f1   :  { %v4403_v36 = vpop.f32.mrf.mxu1  ;;  %v4498_v27 = vpop.f32.mrf.mxu0 }
 0x1f3   :  { %v4405_v37 = vpop.f32.mrf.mxu1 }
 0x1f5   :  { %v4407_v38 = vpop.f32.mrf.mxu1  ;;  %v4500_v28 = vpop.f32.mrf.mxu0 }
 0x1f7   :  { %v4409_v39 = vpop.f32.mrf.mxu1 }
 0x1f9   :  { %v4411_v40 = vpop.f32.mrf.mxu1 }
 0x1fb   :  { %v4413_v41 = vpop.f32.mrf.mxu1 }
 0x1fd   :  { %v4415_v42 = vpop.f32.mrf.mxu1 }
 0x1ff   :  { %v4417_v44 = vpop.f32.mrf.mxu1 }
 0x201   :  { %v4419_v45 = vpop.f32.mrf.mxu1 }
 0x203   :  { %v830_v46 = vpop.f32.mrf.mxu1 }
 0x205   :  { %v3566_v47 = vpop.f32.mrf.mxu1 }
 0x207   :  { %v833_v48 = vpop.f32.mrf.mxu1 }
 0x208   :  { %v869_v4 = vpack.c.bf16 %v833_v48, %v830_v46  ;;  %v4502_v46 = vpop.f32.mrf.mxu0 }
 0x209   :  { %v3567_v49 = vpop.f32.mrf.mxu1 }
 0x20a   :  { %v4504_v47 = vpop.f32.mrf.mxu0 }
 0x20b   :  { %v838_v50 = vpop.f32.mrf.mxu1 }
 0x20c   :  { %v4506_v48 = vpop.f32.mrf.mxu0 }
 0x20d   :  { %v3570_v51 = vpop.f32.mrf.mxu1 }
 0x20e   :  { %v4508_v49 = vpop.f32.mrf.mxu0 }
 0x20f   :  { %v841_v52 = vpop.f32.mrf.mxu1 }
 0x210   :  { %v870_v54 = vpack.c.bf16 %v841_v52, %v838_v50  ;;  %v4510_v50 = vpop.f32.mrf.mxu0 }
 0x211   :  { %v3571_v55 = vpop.f32.mrf.mxu1 }
 0x212   :  { %3593 = vmatmul.mubr.msk.bf16.vlgmr.msra.gmra.mxu0 %vm329_vm1, %v870_v54  ;;  %v4512_v51 = vpop.f32.mrf.mxu0 }
 0x213   :  { %3597 = vmatpush3.bf16.msra.mxu0 %v3771_v53  ;;  %v846_v57 = vpop.f32.mrf.mxu1  ;;  %3604 = vmatprep.mubr.msk.bf16.mxu0 %vm4173_vm2, %v4172_v13 }
 0x214   :  { %3598 = vmatprep.subr.bf16.mxu0 %v4172_v13  ;;  %v4514_v52 = vpop.f32.mrf.mxu0 }
 0x215   :  { %v3574_v58 = vpop.f32.mrf.mxu1 }
 0x217   :  { %3599 = vmatpush3.bf16.msra.mxu0 %v3772_v56  ;;  %v849_v60 = vpop.f32.mrf.mxu1 }
 0x218   :  { %3600 = vmatprep.subr.bf16.mxu0 %v4172_v13  ;;  %v871_v17 = vpack.c.bf16 %v849_v60, %v846_v57 }
 0x219   :  { %v3575_v61 = vpop.f32.mrf.mxu1 }
 0x21b   :  { %3601 = vmatpush3.bf16.msra.mxu0 %v3773_v59  ;;  %v854_v63 = vpop.f32.mrf.mxu1 }
 0x21c   :  { %3602 = vmatprep.subr.bf16.mxu0 %v4172_v13 }
 0x21d   :  { %v3578_v0 = vpop.f32.mrf.mxu1 }
 0x21f   :  { %3603 = vmatpush3.bf16.msra.mxu0 %v3774_v62  ;;  %v857_v2 = vpop.f32.mrf.mxu1 }
 0x220   :  { %3608 = vmatprep.subr.bf16.mxu0 %v4172_v13  ;;  %v872_v6 = vpack.c.bf16 %v857_v2, %v854_v63 }
 0x221   :  { %v3579_v7 = vpop.f32.mrf.mxu1 }
 0x222   :  { %3605 = vmatmul.mubr.msk.bf16.vlgmr.msra.gmra.mxu0 %vm329_vm1, %v869_v4  ;;  %3629 = vmatmul.mubr.msk.bf16.vlgmr.msra.gmra.mxu1 %vm329_vm1, %v872_v6  ;;  %v442_v6 = vlaneseq }
 0x223   :  { %3609 = vmatpush3.bf16.msra.mxu0 %v3776_v1  ;;  %3616 = vmatprep.mubr.msk.bf16.mxu0 %vm4173_vm2, %v4172_v13  ;;  %v862_v9 = vpop.f32.mrf.mxu1 }
 0x224   :  { %3610 = vmatprep.subr.bf16.mxu0 %v4172_v13  ;;  %3650 = vmatprep.mubr.msk.bf16.mxu1 %vm4173_vm2, %v4172_v13 }
 0x225   :  { %v3582_v10 = vpop.f32.mrf.mxu1 }
 0x227   :  { %3611 = vmatpush3.bf16.msra.mxu0 %v3778_v8  ;;  %v865_v12 = vpop.f32.mrf.mxu1  ;;  %v4516_v8 = vshrl.u32 %v442_v6, 7 }
 0x228   :  { %3612 = vmatprep.subr.bf16.mxu0 %v4172_v13  ;;  %v873_v21 = vpack.c.bf16 %v865_v12, %v862_v9 }
 0x229   :  { %v3583_v14 = vpop.f32.mrf.mxu1 }
 0x22a   :  { %v4519_v14 = vld [vmem:[#allocation11] sm:$0x1f] }
 0x22b   :  { %3613 = vmatpush3.bf16.msra.mxu0 %v3780_v11  ;;  %v1266_v11 = vsub.s32 0, %v4516_v8 }
 0x22c   :  { %3614 = vmatprep.subr.bf16.mxu0 %v4172_v13 }
 0x22f   :  { %3615 = vmatpush3.bf16.msra.mxu0 %v3782_v15 }
 0x230   :  { %3632 = vmatprep.subr.bf16.mxu0 %v4172_v13 }
 0x232   :  { %3617 = vmatmul.mubr.msk.bf16.vlgmr.msra.gmra.mxu0 %vm329_vm1, %v871_v17  ;;  %v1267_v17 = vrot.slane %v4519_v14, %v1266_v11  ;;  %v3789_v11 = vld [vmem:[%s5020_s3 + $0x10] sm:$0xff]  }
 0x233   :  { %3633 = vmatpush3.bf16.msra.mxu0 %v3783_v16  ;;  %3640 = vmatprep.mubr.msk.bf16.mxu0 %vm4173_vm2, %v4172_v13 }
 0x234   :  { %3634 = vmatprep.subr.bf16.mxu0 %v4172_v13 }
 0x237   :  { %3635 = vmatpush3.bf16.msra.mxu0 %v3784_v18 }
 0x238   :  { %3636 = vmatprep.subr.bf16.mxu0 %v4172_v13 }
 0x23b   :  { %3637 = vmatpush3.bf16.msra.mxu0 %v3785_v19 }
 0x23c   :  { %3638 = vmatprep.subr.bf16.mxu0 %v4172_v13 }
 0x23f   :  { %3639 = vmatpush3.bf16.msra.mxu0 %v3786_v20 }
 0x240   :  { %3644 = vmatprep.subr.bf16.mxu0 %v4172_v13 }
 0x242   :  { %3641 = vmatmul.mubr.msk.bf16.vlgmr.msra.gmra.mxu0 %vm329_vm1, %v873_v21 }
 0x243   :  { %3646 = vmatprep.mubr.msk.bf16.mxu0 %vm4173_vm2, %v4172_v13 }
 0x2d2   :  { %v952_v53 = vpop.f32.mrf.mxu0 }
 0x2d4   :  { %v3594_v54 = vpop.f32.mrf.mxu0 }
 0x2d6   :  { %v955_v55 = vpop.f32.mrf.mxu0 }
 0x2d8   :  { %v3595_v56 = vpop.f32.mrf.mxu0 }
 0x2e2   :  { %v1020_v57 = vpop.f32.mrf.mxu0  ;;  %v1176_v58 = vpop.f32.mrf.mxu1 }
 0x2e3   :  { %v1021_v9 = vadd.f32 %v1020_v57, %v952_v53 }
 0x2e4   :  { %v3606_v59 = vpop.f32.mrf.mxu0  ;;  %v3630_v60 = vpop.f32.mrf.mxu1 }
 0x2e6   :  { %v1023_v61 = vpop.f32.mrf.mxu0  ;;  %v1179_v62 = vpop.f32.mrf.mxu1 }
 0x2e7   :  { %v1024_v12 = vadd.f32 %v1023_v61, %v955_v55 }
 0x2e8   :  { %v3607_v63 = vpop.f32.mrf.mxu0  ;;  %v3631_v0 = vpop.f32.mrf.mxu1 }
 0x2f2   :  { %v1097_v1 = vpop.f32.mrf.mxu0 }
 0x2f3   :  { %v1104_v10 = vadd.f32 %v1097_v1, %v1021_v9  ;;  %v3788_v9 = vld [vmem:[%s5020_s3] sm:$0xff]  }
 0x2f4   :  { %v3618_v2 = vpop.f32.mrf.mxu0 }
 0x2f5   :  { %v1183_v16 = vadd.f32 %v1176_v58, %v1104_v10  ;;  %v3790_v10 = vld [vmem:[%s5021_s4 + $0x18] sm:$0xff]  }
 0x2f6   :  { %v1100_v4 = vpop.f32.mrf.mxu0 }
 0x2f7   :  { %v1105_v15 = vadd.f32 %v1100_v4, %v1024_v12  ;;  %v3791_v12 = vld [vmem:[%s5021_s4 + $0x10] sm:$0xff]  }
 0x2f8   :  { %v3619_v7 = vpop.f32.mrf.mxu0 }
 0x2f9   :  { %v1184_v54 = vadd.f32 %v1179_v62, %v1105_v15  ;;  %v3787_v62 = vld [vmem:[%s5020_s3 + $0x8] sm:$0xff]  }
 0x2fa   :  { %v3793_v15 = vld [vmem:[%s5021_s4 + $0x28] sm:$0xff]  }
 0x302   :  { %v1255_v18 = vpop.f32.mrf.mxu0 }
 0x303   :  { %v1262_v19 = vadd.f32 %v1255_v18, %v1183_v16  ;;  %v3795_v16 = vld [vmem:[%s5021_s4 + $0x20] sm:$0xff]  }
 0x304   :  { %v3642_v20 = vpop.f32.mrf.mxu0 }
 0x305   :  { %v1268_v21 = vadd.f32 %v1267_v17, %v1262_v19 }
 0x306   :  { %v1258_v56 = vpop.f32.mrf.mxu0 }
 0x307   :  { %v1272_v59 = vmin.f32 %v1268_v21, 0.0  ;;  %v1263_v60 = vadd.f32 %v1258_v56, %v1184_v54  ;;  %vm1270_vm3 = vcmp.gt.f32.partialorder %v1268_v21, 0.0  ;;  %v3792_v56 = vld [vmem:[%s5021_s4 + $0x8] sm:$0xff]  }
 0x308   :  { %v3643_v63 = vpop.f32.mrf.mxu0 }
 0x309   :  { %v1274_v53 = vmul.f32 1.442695, %v1272_v59  ;;  %v1269_v57 = vadd.f32 %v1267_v17, %v1263_v60 }
 0x30b   :  { %3960 = vpow2.f32 %v1274_v53  ;;  %v1273_v0 = vmin.f32 %v1269_v57, 0.0  ;;  %vm1271_vm4 = vcmp.gt.f32.partialorder %v1269_v57, 0.0 }
 0x30d   :  { %v1276_v55 = vmul.f32 1.442695, %v1273_v0 }
 0x30f   :  { %3962 = vpow2.f32 %v1276_v55 }
 0x318   :  { %v3961_v61 = vpop.eup %3960 }
 0x319   :  { %v3321_v1 = vadd.f32 -1.0, %v3961_v61 }
 0x31b   :  { %v1280_v4 = vsel %vm1270_vm3, %v1268_v21, %v3321_v1 }
 0x31c   :  { %v3963_v58 = vpop.eup %3962 }
 0x31d   :  { %v3322_v2 = vadd.f32 -1.0, %v3963_v58 }
 0x31f   :  { %v1281_v6 = vsel %vm1271_vm4, %v1269_v57, %v3322_v2  ;;  %v3794_v57 = vld [vmem:[%s5021_s4] sm:$0xff]  }
 0x320   :  { %v1282_v7 = vpack.c.bf16 %v1281_v6, %v1280_v4  ;;  %v3796_v2 = vld [vmem:[%s5022_s5] sm:$0xff]   ;;  %v3797_v4 = vld [vmem:[%s5022_s5 + $0x8] sm:$0xff]   ;;  %v3798_v6 = vld [vmem:[%s5022_s5 + $0x10] sm:$0xff]  }
 0x322   :  { %3645 = vmatpush3.bf16.msra.mxu0 %v1282_v7  ;;  %3743 = vmatpush3.bf16.msra.mxu1 %v1282_v7 }
 0x323   :  { %3658 = vmatprep.subr.bf16.mxu0 %v4172_v13  ;;  %3674 = vmatprep.subr.bf16.mxu1 %v4172_v13 }
 0x325   :  { %3651 = vmatmul.mubr.msk.bf16.vlgmr.msra.gmra.mxu1 %vm1304_vm5, %v3787_v62  ;;  %3647 = vmatmul.mubr.msk.bf16.vlgmr.msra.gmra.mxu0 %vm1304_vm5, %v3788_v9  ;;  %v3800_v62 = vld [vmem:[%s5022_s5 + $0x20] sm:$0xff]   ;;  %v3804_v9 = vld [vmem:[#allocation5 + $0x30] ss:$8 sps:$4 sm:$0xff]  }
 0x326   :  { %3654 = vmatprep.mubr.msk.bf16.mxu1 %vm4173_vm2, %v4172_v13  ;;  %3659 = vmatpush3.bf16.msra.mxu0 %v3790_v10  ;;  %v3806_v10 = vld [vmem:[#allocation5 + $0x34] ss:$8 sps:$4 sm:$0xff]  }
 0x327   :  { %3660 = vmatprep.subr.bf16.mxu0 %v4172_v13  ;;  %3662 = vmatprep.mubr.msk.bf16.mxu0 %vm4173_vm2, %v4172_v13 }
 0x328   :  { %3675 = vmatpush3.bf16.msra.mxu1 %v3793_v15  ;;  %v3812_v15 = vld [vmem:[#allocation5 + $0x14] ss:$8 sps:$4 sm:$0xff]  }
 0x329   :  { %3676 = vmatprep.subr.bf16.mxu1 %v4172_v13 }
 0x32a   :  { %3661 = vmatpush3.bf16.msra.mxu0 %v3791_v12  ;;  %v3807_v12 = vld [vmem:[#allocation5 + $0x20] ss:$8 sps:$4 sm:$0xff]  }
 0x32b   :  { %3666 = vmatprep.subr.bf16.mxu0 %v4172_v13 }
 0x32c   :  { %3677 = vmatpush3.bf16.msra.mxu1 %v3795_v16 }
 0x32d   :  { %3655 = vmatmul.mubr.msk.bf16.gmra.mxu1 %vm1304_vm5, %v3789_v11  ;;  %v3809_v11 = vld [vmem:[#allocation5 + $0x24] ss:$8 sps:$4 sm:$0xff]   ;;  %1737 = vmatprep.subr.bf16.mxu1 %v3806_v10 }
 0x32e   :  { %3678 = vmatprep.mubr.msk.bf16.mxu1 %vm4173_vm2, %v4172_v13 }
 0x3e5   :  { %v1356_v17 = vpop.f32.mrf.mxu1  ;;  %v1348_v18 = vpop.f32.mrf.mxu0 }
 0x3e7   :  { %v3652_v19 = vpop.f32.mrf.mxu1  ;;  %v3648_v20 = vpop.f32.mrf.mxu0 }
 0x3e8   :  { %v1556_v19 = vsub.s32 1, %v4516_v8 }
 0x3e9   :  { %v1359_v21 = vpop.f32.mrf.mxu1  ;;  %v1351_v54 = vpop.f32.mrf.mxu0 }
 0x3ea   :  { %v1372_v59 = vpack.c.bf16 %v1359_v21, %v1356_v17  ;;  %v1371_v61 = vpack.c.bf16 %v1351_v54, %v1348_v18 }
 0x3eb   :  { %v3653_v60 = vpop.f32.mrf.mxu1  ;;  %v3649_v63 = vpop.f32.mrf.mxu0 }
 0x3ec   :  { %3663 = vmatmul.mubr.msk.bf16.vlgmr.msra.gmra.mxu0 %vm191_vm0, %v1372_v59  ;;  %v1557_v59 = vrot.slane %v4519_v14, %v1556_v19  ;;  %v3813_v19 = vld [vmem:[#allocation5] ss:$8 sps:$4 sm:$0xff]  }
 0x3ed   :  { %3667 = vmatpush3.bf16.msra.mxu0 %v3792_v56  ;;  %v1364_v53 = vpop.f32.mrf.mxu1  ;;  %3670 = vmatprep.mubr.msk.bf16.mxu0 %vm4173_vm2, %v4172_v13 }
 0x3ee   :  { %3668 = vmatprep.subr.bf16.mxu0 %v4172_v13 }
 0x3ef   :  { %v3656_v0 = vpop.f32.mrf.mxu1 }
 0x3f1   :  { %3669 = vmatpush3.bf16.msra.mxu0 %v3794_v57  ;;  %v1367_v55 = vpop.f32.mrf.mxu1 }
 0x3f2   :  { %v1373_v1 = vpack.c.bf16 %v1367_v55, %v1364_v53  ;;  %3682 = vmatprep.subr.bf16.mxu0 %v4172_v13 }
 0x3f3   :  { %v3657_v58 = vpop.f32.mrf.mxu1 }
 0x3f4   :  { %3671 = vmatmul.mubr.msk.bf16.vlgmr.msra.gmra.mxu0 %vm191_vm0, %v1371_v61  ;;  %3679 = vmatmul.mubr.msk.bf16.vlgmr.msra.gmra.mxu1 %vm191_vm0, %v1373_v1 }
 0x3f5   :  { %3683 = vmatpush3.bf16.msra.mxu0 %v1282_v7  ;;  %3684 = vmatprep.mubr.msk.bf16.mxu0 %vm4173_vm2, %v4172_v13  ;;  %v3799_v7 = vld [vmem:[%s5022_s5 + $0x18] sm:$0xff]  }
 0x3f6   :  { %3704 = vmatprep.subr.bf16.mxu0 %v4172_v13  ;;  %1757 = vmatprep.mubr.bf16.mxu1 %v4171_v43 }
 0x3f7   :  { %1738 = vmatpush1.bf16.msra.mxu1 %v3804_v9 }
 0x3f8   :  { %1739 = vmatprep.subr.bf16.mxu1 %v3809_v11 }
 0x3fb   :  { %1740 = vmatpush1.bf16.msra.mxu1 %v3807_v12  ;;  %v3810_v12 = vld [vmem:[#allocation5 + $0x10] ss:$8 sps:$4 sm:$0xff]  }
 0x3fc   :  { %3685 = vmatmul.mubr.msk.bf16.vlgmr.msra.gmra.mxu0 %vm1304_vm5, %v3796_v2  ;;  %1803 = vmatprep.subr.bf16.mxu1 %v3812_v15 }
 0x3fd   :  { %3688 = vmatprep.mubr.msk.bf16.mxu0 %vm4173_vm2, %v4172_v13 }
 0x404   :  { %3689 = vmatmul.mubr.msk.bf16.gmra.mxu0 %vm1304_vm5, %v3797_v4 }
 0x405   :  { %3692 = vmatprep.mubr.msk.bf16.mxu0 %vm4173_vm2, %v4172_v13 }
 0x40c   :  { %3693 = vmatmul.mubr.msk.bf16.gmra.mxu0 %vm1304_vm5, %v3798_v6 }
 0x40d   :  { %3696 = vmatprep.mubr.msk.bf16.mxu0 %vm4173_vm2, %v4172_v13 }
 0x414   :  { %3697 = vmatmul.mubr.msk.bf16.gmra.mxu0 %vm1304_vm5, %v3799_v7 }
 0x415   :  { %3700 = vmatprep.mubr.msk.bf16.mxu0 %vm4173_vm2, %v4172_v13 }
 0x41c   :  { %3701 = vmatmul.mubr.msk.bf16.gmra.mxu0 %vm1304_vm5, %v3800_v62 }
 0x41d   :  { %3706 = vmatprep.mubr.msk.bf16.mxu0 %vm4173_vm2, %v4172_v13 }
 0x4ac   :  { %v1432_v16 = vpop.f32.mrf.mxu0 }
 0x4ae   :  { %v3664_v17 = vpop.f32.mrf.mxu0 }
 0x4b0   :  { %v1435_v18 = vpop.f32.mrf.mxu0 }
 0x4b2   :  { %v3665_v20 = vpop.f32.mrf.mxu0 }
 0x4b4   :  { %v1487_v21 = vpop.f32.mrf.mxu0  ;;  %v1547_v54 = vpop.f32.mrf.mxu1 }
 0x4b5   :  { %v1488_v56 = vadd.f32 %v1487_v21, %v1432_v16  ;;  %v3815_v16 = vld [vmem:[#allocation5 + $0x4] ss:$8 sps:$4 sm:$0xff]  }
 0x4b6   :  { %v3672_v60 = vpop.f32.mrf.mxu0  ;;  %v3680_v63 = vpop.f32.mrf.mxu1 }
 0x4b7   :  { %v1553_v53 = vadd.f32 %v1547_v54, %v1488_v56  ;;  %v3818_v54 = vld [vmem:[#allocation5 + $0x54] ss:$8 sps:$4 sm:$0xff]  }
 0x4b8   :  { %v1490_v57 = vpop.f32.mrf.mxu0  ;;  %v1550_v0 = vpop.f32.mrf.mxu1 }
 0x4b9   :  { %v1558_v55 = vadd.f32 %v1557_v59, %v1553_v53  ;;  %v3816_v53 = vld [vmem:[#allocation5 + $0x50] ss:$8 sps:$4 sm:$0xff]   ;;  %v3821_v0 = vld [vmem:[#allocation5 + $0x44] ss:$8 sps:$4 sm:$0xff]  }
 0x4ba   :  { %v3673_v61 = vpop.f32.mrf.mxu0  ;;  %v3681_v1 = vpop.f32.mrf.mxu1 }
 0x4bb   :  { %v1560_v58 = vmin.f32 %v1558_v55, 0.0  ;;  %vm1559_vm6 = vcmp.gt.f32.partialorder %v1558_v55, 0.0  ;;  %v3801_v1 = vld [vmem:[%s5024_s7] sm:$0xff]  }
 0x4bc   :  { %v1649_v2 = vpop.f32.mrf.mxu0 }
 0x4bd   :  { %v1561_v4 = vmul.f32 1.442695, %v1560_v58 }
 0x4be   :  { %v3686_v6 = vpop.f32.mrf.mxu0 }
 0x4bf   :  { %3964 = vpow2.f32 %v1561_v4  ;;  %v3824_v4 = vld [vmem:[#allocation5 + $0x74] ss:$8 sps:$4 sm:$0xff]  }
 0x4c0   :  { %v1652_v7 = vpop.f32.mrf.mxu0 }
 0x4c1   :  { %v1688_v60 = vpack.c.bf16 %v1652_v7, %v1649_v2 }
 0x4c2   :  { %v3687_v62 = vpop.f32.mrf.mxu0 }
 0x4c3   :  { %v3822_v62 = vld [vmem:[#allocation5 + $0x70] ss:$8 sps:$4 sm:$0xff]  }
 0x4c4   :  { %v1657_v9 = vpop.f32.mrf.mxu0 }
 0x4c6   :  { %v3690_v10 = vpop.f32.mrf.mxu0 }
 0x4c7   :  { %v3827_v10 = vld [vmem:[#allocation5 + $0x64] ss:$8 sps:$4 sm:$0xff]  }
 0x4c8   :  { %v1660_v11 = vpop.f32.mrf.mxu0 }
 0x4c9   :  { %v1689_v15 = vpack.c.bf16 %v1660_v11, %v1657_v9  ;;  %v3802_v11 = vld [vmem:[%s5024_s7 + $0x8] sm:$0xff]  }
 0x4ca   :  { %v3691_v17 = vpop.f32.mrf.mxu0 }
 0x4cb   :  { %3361 = vmatmul.mubr.msk.bf16.vlgmr.msra.gmra.mxu1 %vm191_vm0, %v1689_v15  ;;  %v3825_v15 = vld [vmem:[#allocation5 + $0x60] ss:$8 sps:$4 sm:$0xff]   ;;  %v3830_v17 = vld [vmem:[#allocation5 + $0x94] ss:$8 sps:$4 sm:$0xff]  }
 0x4cc   :  { %v3965_v18 = vpop.eup %3964  ;;  %1804 = vmatpush1.bf16.msra.mxu1 %v3810_v12  ;;  %1823 = vmatprep.mubr.bf16.mxu1 %v4171_v43  ;;  %v1665_v20 = vpop.f32.mrf.mxu0 }
 0x4cd   :  { %v3346_v21 = vadd.f32 -1.0, %v3965_v18  ;;  %1805 = vmatprep.subr.bf16.mxu1 %v3815_v16 }
 0x4ce   :  { %v3694_v56 = vpop.f32.mrf.mxu0 }
 0x4cf   :  { %v1564_v59 = vsel %vm1559_vm6, %v1558_v55, %v3346_v21  ;;  %v3819_v55 = vld [vmem:[#allocation5 + $0x40] ss:$8 sps:$4 sm:$0xff]   ;;  %v3803_v56 = vld [vmem:[%s5024_s7 + $0x10] sm:$0xff]  }
 0x4d0   :  { %v2095_v63 = vpack.c.bf16 %v1564_v59, %v1564_v59  ;;  %1806 = vmatpush1.bf16.msra.mxu1 %v3813_v19  ;;  %v1668_v57 = vpop.f32.mrf.mxu0 }
 0x4d1   :  { %1874 = vmatprep.subr.bf16.mxu1 %v3818_v54  ;;  %v1690_v7 = vpack.c.bf16 %v1668_v57, %v1665_v20  ;;  %v3828_v20 = vld [vmem:[#allocation5 + $0x90] ss:$8 sps:$4 sm:$0xff]   ;;  %v3833_v54 = vld [vmem:[#allocation5 + $0x84] ss:$8 sps:$4 sm:$0xff]  }
 0x4d2   :  { %v2129_v61 = vsel %vm2127_vm7, %v2095_v63, 0  ;;  %v3695_v58 = vpop.f32.mrf.mxu0 }
 0x4d3   :  { %3705 = vmatpush3.bf16.msra.mxu0 %v2129_v61  ;;  %3366 = vmatmul.mubr.msk.bf16.vlgmr.msra.gmra.mxu1 %vm191_vm0, %v1688_v60  ;;  %v3831_v60 = vld [vmem:[#allocation5 + $0x80] ss:$8 sps:$4 sm:$0xff]  }
 0x4d4   :  { %1875 = vmatpush1.bf16.msra.mxu1 %v3816_v53  ;;  %1894 = vmatprep.mubr.bf16.mxu1 %v4171_v43  ;;  %v1673_v2 = vpop.f32.mrf.mxu0  ;;  %v3834_v53 = vld [vmem:[#allocation7 + $0x8] sm:$0xff]  }
 0x4d5   :  { %1876 = vmatprep.subr.bf16.mxu1 %v3821_v0  ;;  %3736 = vmatprep.subr.bf16.mxu0 %v4172_v13 }
 0x4d6   :  { %3707 = vmatmul.mubr.msk.bf16.vlgmr.msra.gmra.mxu0 %vm2117_vm8, %v3801_v1  ;;  %v3698_v6 = vpop.f32.mrf.mxu0 }
 0x4d7   :  { %3710 = vmatprep.mubr.msk.bf16.mxu0 %vm4173_vm2, %v4172_v13 }
 0x4d8   :  { %1877 = vmatpush1.bf16.msra.mxu1 %v3819_v55  ;;  %v1676_v9 = vpop.f32.mrf.mxu0 }
 0x4d9   :  { %1949 = vmatprep.subr.bf16.mxu1 %v3824_v4  ;;  %v1691_v19 = vpack.c.bf16 %v1676_v9, %v1673_v2 }
 0x4da   :  { %v3699_v12 = vpop.f32.mrf.mxu0 }
 0x4db   :  { %3371 = vmatmul.mubr.msk.bf16.vlgmr.msra.gmra.mxu1 %vm191_vm0, %v1690_v7 }
 0x4dc   :  { %1950 = vmatpush1.bf16.msra.mxu1 %v3822_v62  ;;  %1969 = vmatprep.mubr.bf16.mxu1 %v4171_v43  ;;  %v1681_v16 = vpop.f32.mrf.mxu0 }
 0x4dd   :  { %1951 = vmatprep.subr.bf16.mxu1 %v3827_v10 }
 0x4de   :  { %3711 = vmatmul.mubr.msk.bf16.gmra.mxu0 %vm2117_vm8, %v3802_v11  ;;  %v3702_v18 = vpop.f32.mrf.mxu0 }
 0x4df   :  { %3714 = vmatprep.mubr.msk.bf16.mxu0 %vm4173_vm2, %v4172_v13 }
 0x4e0   :  { %1952 = vmatpush1.bf16.msra.mxu1 %v3825_v15  ;;  %v1684_v21 = vpop.f32.mrf.mxu0 }
 0x4e1   :  { %2024 = vmatprep.subr.bf16.mxu1 %v3830_v17  ;;  %v1692_v63 = vpack.c.bf16 %v1684_v21, %v1681_v16 }
 0x4e2   :  { %v3703_v59 = vpop.f32.mrf.mxu0 }
 0x4e3   :  { %3376 = vmatmul.mubr.msk.bf16.vlgmr.msra.gmra.mxu1 %vm191_vm0, %v1691_v19 }
 0x4e4   :  { %2025 = vmatpush1.bf16.msra.mxu1 %v3828_v20  ;;  %2044 = vmatprep.mubr.bf16.mxu1 %v4171_v43 }
 0x4e5   :  { %2026 = vmatprep.subr.bf16.mxu1 %v3833_v54 }
 0x4e6   :  { %3715 = vmatmul.mubr.msk.bf16.gmra.mxu0 %vm2117_vm8, %v3803_v56 }
 0x4e7   :  { %3738 = vmatprep.mubr.msk.bf16.mxu0 %vm4173_vm2, %v4172_v13 }
 0x4e8   :  { %2027 = vmatpush1.bf16.msra.mxu1 %v3831_v60 }
 0x4e9   :  { %3718 = vmatprep.subr.bf16.mxu1 %v4172_v13 }
 0x4eb   :  { %3381 = vmatmul.mubr.msk.bf16.vlgmr.msra.gmra.mxu1 %vm191_vm0, %v1692_v63  ;;  %v3835_v63 = vld [vmem:[#allocation7] sm:$0xff]  }
 0x4ec   :  { %3720 = vmatprep.mubr.msk.bf16.mxu1 %vm4173_vm2, %v4172_v13  ;;  %3719 = vmatpush3.bf16.msra.mxu1 %v3834_v53 }
 0x4ed   :  { %3724 = vmatprep.subr.bf16.mxu1 %v4172_v13 }
 0x58b   :  { %v1759_v57 = vpop.f32.mrf.mxu1 }
 0x58d   :  { %v1761_v0 = vpop.f32.mrf.mxu1 }
 0x58f   :  { %v1763_v61 = vpop.f32.mrf.mxu1 }
 0x591   :  { %v1765_v1 = vpop.f32.mrf.mxu1 }
 0x593   :  { %v1825_v58 = vpop.f32.mrf.mxu1 }
 0x594   :  { %v1826_v55 = vadd.f32 %v1825_v58, %v1759_v57 }
 0x595   :  { %v1827_v2 = vpop.f32.mrf.mxu1 }
 0x596   :  { %v2165_v4 = vpop.f32.mrf.mxu0  ;;  %v1828_v6 = vadd.f32 %v1827_v2, %v1761_v0 }
 0x597   :  { %v1829_v7 = vpop.f32.mrf.mxu1 }
 0x598   :  { %v3708_v62 = vpop.f32.mrf.mxu0  ;;  %v1830_v9 = vadd.f32 %v1829_v7, %v1763_v61 }
 0x599   :  { %v1831_v10 = vpop.f32.mrf.mxu1 }
 0x59a   :  { %v2168_v11 = vpop.f32.mrf.mxu0  ;;  %v1832_v12 = vadd.f32 %v1831_v10, %v1765_v1 }
 0x59b   :  { %v1896_v15 = vpop.f32.mrf.mxu1 }
 0x59c   :  { %v3709_v16 = vpop.f32.mrf.mxu0  ;;  %v1905_v17 = vadd.f32 %v1896_v15, %v1826_v55 }
 0x59d   :  { %v1898_v18 = vpop.f32.mrf.mxu1  ;;  %v2188_v16 = vpack.c.bf16 %v2168_v11, %v2165_v4  ;;  %v3838_v4 = vld [vmem:[#allocation8 + $0x70] ss:$8 sps:$4 sm:$0xff]   ;;  %v3840_v11 = vld [vmem:[#allocation8 + $0x74] ss:$8 sps:$4 sm:$0xff]  }
 0x59e   :  { %v2173_v19 = vpop.f32.mrf.mxu0  ;;  %v1906_v20 = vadd.f32 %v1898_v18, %v1828_v6 }
 0x59f   :  { %v1900_v21 = vpop.f32.mrf.mxu1 }
 0x5a0   :  { %v3712_v54 = vpop.f32.mrf.mxu0  ;;  %v1907_v56 = vadd.f32 %v1900_v21, %v1830_v9 }
 0x5a1   :  { %v1902_v59 = vpop.f32.mrf.mxu1 }
 0x5a2   :  { %v2176_v60 = vpop.f32.mrf.mxu0  ;;  %v1908_v53 = vadd.f32 %v1902_v59, %v1832_v12  ;;  %v3836_v12 = vld [vmem:[#allocation7 + $0x10] sm:$0xff]  }
 0x5a3   :  { %v2189_v57 = vpack.c.bf16 %v2176_v60, %v2173_v19  ;;  %v1971_v0 = vpop.f32.mrf.mxu1  ;;  %v3843_v60 = vld [vmem:[#allocation8 + $0x64] ss:$8 sps:$4 sm:$0xff]  }
 0x5a4   :  { %v3713_v58 = vpop.f32.mrf.mxu0  ;;  %v1980_v61 = vadd.f32 %v1971_v0, %v1905_v17  ;;  %v3847_v0 = vld [vmem:[#allocation8 + $0x40] ss:$8 sps:$4 sm:$0xff]  }
 0x5a5   :  { %3721 = vmatmul.mubr.msk.bf16.vlgmr.msra.gmra.mxu1 %vm1304_vm5, %v2189_v57  ;;  %v1973_v1 = vpop.f32.mrf.mxu1  ;;  %v3849_v57 = vld [vmem:[#allocation8 + $0x44] ss:$8 sps:$4 sm:$0xff]   ;;  %v3852_v58 = vld [vmem:[#allocation8 + $0x34] ss:$8 sps:$4 sm:$0xff]  }
 0x5a6   :  { %3725 = vmatpush3.bf16.msra.mxu1 %v3835_v63  ;;  %3726 = vmatprep.mubr.msk.bf16.mxu1 %vm4173_vm2, %v4172_v13  ;;  %v2181_v55 = vpop.f32.mrf.mxu0  ;;  %v1981_v2 = vadd.f32 %v1973_v1, %v1906_v20  ;;  %v3841_v63 = vld [vmem:[#allocation8 + $0x60] ss:$8 sps:$4 sm:$0xff]   ;;  %v3855_v1 = vld [vmem:[#allocation8 + $0x24] ss:$8 sps:$4 sm:$0xff]  }
 0x5a7   :  { %3730 = vmatprep.subr.bf16.mxu1 %v4172_v13  ;;  %v1975_v6 = vpop.f32.mrf.mxu1 }
 0x5a8   :  { %v3716_v7 = vpop.f32.mrf.mxu0  ;;  %v1982_v62 = vadd.f32 %v1975_v6, %v1907_v56  ;;  %v3856_v6 = vld [vmem:[#allocation8 + $0x10] ss:$8 sps:$4 sm:$0xff]  }
 0x5a9   :  { %v1977_v9 = vpop.f32.mrf.mxu1 }
 0x5aa   :  { %v2184_v10 = vpop.f32.mrf.mxu0  ;;  %v4643_v15 = vadd.f32 %v1977_v9, %v1908_v53  ;;  %v3846_v53 = vld [vmem:[#allocation8 + $0x54] ss:$8 sps:$4 sm:$0xff]  }
 0x5ab   :  { %v2046_v17 = vpop.f32.mrf.mxu1  ;;  %v2190_v59 = vpack.c.bf16 %v2184_v10, %v2181_v55  ;;  %v3853_v55 = vld [vmem:[#allocation8 + $0x20] ss:$8 sps:$4 sm:$0xff]  }
 0x5ac   :  { %v3717_v18 = vpop.f32.mrf.mxu0  ;;  %v4645_v19 = vadd.f32 %v2046_v17, %v1980_v61  ;;  %v3850_v61 = vld [vmem:[#allocation8 + $0x30] ss:$8 sps:$4 sm:$0xff]  }
 0x5ad   :  { %3727 = vmatmul.mubr.msk.bf16.vlgmr.msra.gmra.mxu1 %vm1304_vm5, %v2188_v16  ;;  %v2048_v21 = vpop.f32.mrf.mxu1  ;;  %v2349_v18 = vsub.s32 3, %v4516_v8 }
 0x5ae   :  { %3731 = vmatpush3.bf16.msra.mxu1 %v3836_v12  ;;  %3732 = vmatprep.mubr.msk.bf16.mxu1 %vm4173_vm2, %v4172_v13  ;;  %v4650_v20 = vadd.f32 %v2048_v21, %v1981_v2  ;;  %v3844_v13 = vld [vmem:[#allocation8 + $0x50] ss:$8 sps:$4 sm:$0xff]   ;;  %v3858_v2 = vld [vmem:[#allocation8 + $0x14] ss:$8 sps:$4 sm:$0xff]  }
 0x5af   :  { %v2050_v54 = vpop.f32.mrf.mxu1  ;;  %2510 = vmatprep.subr.bf16.mxu1 %v3840_v11 }
 0x5b0   :  { %v4652_v56 = vadd.f32 %v2050_v54, %v1982_v62 }
 0x5b1   :  { %v4656_v7 = vpop.f32.mrf.mxu1 }
 0x5b5   :  { %3733 = vmatmul.mubr.msk.bf16.vlgmr.msra.gmra.mxu1 %vm1304_vm5, %v2190_v59 }
 0x5b6   :  { %2542 = vmatprep.mubr.bf16.mxu1 %v4171_v43  ;;  %2511 = vmatpush1.bf16.msra.mxu1 %v3838_v4  ;;  %v2350_v4 = vrot.slane %v4519_v14, %v2349_v18 }
 0x5b7   :  { %2512 = vmatprep.subr.bf16.mxu1 %v3843_v60 }
 0x5ba   :  { %2513 = vmatpush1.bf16.msra.mxu1 %v3841_v63 }
 0x5bb   :  { %2514 = vmatprep.subr.bf16.mxu1 %v3846_v53 }
 0x5be   :  { %2515 = vmatpush1.bf16.msra.mxu1 %v3844_v13 }
 0x5bf   :  { %2516 = vmatprep.subr.bf16.mxu1 %v3849_v57 }
 0x5c2   :  { %2517 = vmatpush1.bf16.msra.mxu1 %v3847_v0 }
 0x5c3   :  { %2518 = vmatprep.subr.bf16.mxu1 %v3852_v58 }
 0x5c6   :  { %2519 = vmatpush1.bf16.msra.mxu1 %v3850_v61 }
 0x5c7   :  { %2520 = vmatprep.subr.bf16.mxu1 %v3855_v1 }
 0x5ca   :  { %2521 = vmatpush1.bf16.msra.mxu1 %v3853_v55 }
 0x5cb   :  { %2522 = vmatprep.subr.bf16.mxu1 %v3858_v2 }
 0x5ce   :  { %2523 = vmatpush1.bf16.msra.mxu1 %v3856_v6 }
 0x665   :  { %v2239_v62 = vpop.f32.mrf.mxu1 }
 0x667   :  { %v3722_v9 = vpop.f32.mrf.mxu1 }
 0x668   :  { %v3859_v9 = vld [vmem:[#allocation8] ss:$8 sps:$4 sm:$0xff]  }
 0x669   :  { %v2242_v10 = vpop.f32.mrf.mxu1 }
 0x66a   :  { %v3861_v10 = vld [vmem:[#allocation8 + $0x4] ss:$8 sps:$4 sm:$0xff]  }
 0x66b   :  { %v3723_v12 = vpop.f32.mrf.mxu1  ;;  %2524 = vmatprep.subr.bf16.mxu1 %v3861_v10  ;;  %v3923_v10 = vld [vmem:[%s5029_s12 + $0x1cc] ss:$16 sps:$4 sm:$0xff]  }
 0x66c   :  { %2525 = vmatpush1.bf16.msra.mxu1 %v3859_v9  ;;  %v3915_v9 = vld [vmem:[%s5029_s12 + $0x1e8] ss:$16 sps:$4 sm:$0xff]  }
 0x66d   :  { %v2288_v16 = vpop.f32.mrf.mxu1 }
 0x66e   :  { %v2289_v59 = vadd.f32 %v2288_v16, %v2239_v62  ;;  %v3837_v62 = vld [vmem:[%s5026_s9] sm:$0xff]  }
 0x66f   :  { %v3728_v17 = vpop.f32.mrf.mxu1 }
 0x671   :  { %v2291_v21 = vpop.f32.mrf.mxu1 }
 0x673   :  { %v3729_v54 = vpop.f32.mrf.mxu1 }
 0x674   :  { %v3867_v54 = vld [vmem:[%s5029_s12 + $0xe8] ss:$16 sps:$4 sm:$0xff]  }
 0x675   :  { %v2340_v11 = vpop.f32.mrf.mxu1 }
 0x676   :  { %v2346_v60 = vadd.f32 %v2340_v11, %v2289_v59  ;;  %v3869_v59 = vld [vmem:[%s5029_s12 + $0xec] ss:$16 sps:$4 sm:$0xff]   ;;  %v3873_v11 = vld [vmem:[%s5029_s12 + $0xc8] ss:$16 sps:$4 sm:$0xff]  }
 0x677   :  { %v3734_v63 = vpop.f32.mrf.mxu1  ;;  %3073 = vmatprep.subr.bf16.mxu1 %v3869_v59  ;;  %v3939_v59 = vld [vmem:[%s5029_s12 + $0x168] ss:$16 sps:$4 sm:$0xff]  }
 0x678   :  { %v2351_v53 = vadd.f32 %v2350_v4, %v2346_v60  ;;  %v3875_v4 = vld [vmem:[%s5029_s12 + $0xcc] ss:$16 sps:$4 sm:$0xff]   ;;  %v3879_v63 = vld [vmem:[%s5029_s12 + $0xa8] ss:$16 sps:$4 sm:$0xff]  }
 0x679   :  { %v2343_v13 = vpop.f32.mrf.mxu1  ;;  %v3881_v60 = vld [vmem:[%s5029_s12 + $0xac] ss:$16 sps:$4 sm:$0xff]  }
 0x67a   :  { %v2353_v57 = vmin.f32 %v2351_v53, 0.0  ;;  %vm2352_vm9 = vcmp.gt.f32.partialorder %v2351_v53, 0.0  ;;  %v3885_v13 = vld [vmem:[%s5029_s12 + $0x88] ss:$16 sps:$4 sm:$0xff]  }
 0x67b   :  { %v3735_v0 = vpop.f32.mrf.mxu1 }
 0x67c   :  { %v2354_v58 = vmul.f32 1.442695, %v2353_v57  ;;  %v3893_v57 = vld [vmem:[%s5029_s12 + $0x6c] ss:$16 sps:$4 sm:$0xff]   ;;  %v3891_v0 = vld [vmem:[%s5029_s12 + $0x68] ss:$16 sps:$4 sm:$0xff]  }
 0x67e   :  { %3966 = vpow2.f32 %v2354_v58  ;;  %v3899_v58 = vld [vmem:[%s5029_s12 + $0x4c] ss:$16 sps:$4 sm:$0xff]  }
 0x68b   :  { %v3967_v61 = vpop.eup %3966 }
 0x68c   :  { %v3398_v1 = vadd.f32 -1.0, %v3967_v61  ;;  %v3897_v61 = vld [vmem:[%s5029_s12 + $0x48] ss:$16 sps:$4 sm:$0xff]  }
 0x68e   :  { %v2357_v55 = vsel %vm2352_vm9, %v2351_v53, %v3398_v1  ;;  %v3887_v53 = vld [vmem:[%s5029_s12 + $0x8c] ss:$16 sps:$4 sm:$0xff]  }
 0x68f   :  { %v2358_v2 = vpack.c.bf16 %v2357_v55, %v2357_v55  ;;  %v3905_v1 = vld [vmem:[%s5029_s12 + $0x2c] ss:$16 sps:$4 sm:$0xff]   ;;  %v3903_v55 = vld [vmem:[%s5029_s12 + $0x28] ss:$16 sps:$4 sm:$0xff]  }
 0x691   :  { %v2370_v6 = vsel %vm2127_vm7, %v2358_v2, 0  ;;  %v3911_v2 = vld [vmem:[%s5029_s12 + $0xc] ss:$16 sps:$4 sm:$0xff]  }
 0x692   :  { %3737 = vmatpush3.bf16.msra.mxu0 %v2370_v6  ;;  %v3909_v6 = vld [vmem:[%s5029_s12 + $0x8] ss:$16 sps:$4 sm:$0xff]  }
 0x695   :  { %3739 = vmatmul.mubr.msk.bf16.vlgmr.msra.gmra.mxu0 %vm2117_vm8, %v3837_v62  ;;  %v3917_v62 = vld [vmem:[%s5029_s12 + $0x1ec] ss:$16 sps:$4 sm:$0xff]  }
 0x696   :  { %2611 = vmatprep.mubr.bf16.mxu0 %v4171_v43 }
 0x755   :  { %v2406_v12 = vpop.f32.mrf.mxu0 }
 0x757   :  { %v3740_v16 = vpop.f32.mrf.mxu0 }
 0x758   :  { %v3929_v16 = vld [vmem:[%s5029_s12 + $0x1ac] ss:$16 sps:$4 sm:$0xff]  }
 0x759   :  { %v2409_v17 = vpop.f32.mrf.mxu0 }
 0x75a   :  { %v2413_v18 = vpack.c.bf16 %v2409_v17, %v2406_v12  ;;  %v3921_v12 = vld [vmem:[%s5029_s12 + $0x1c8] ss:$16 sps:$4 sm:$0xff]  }
 0x75b   :  { %v3741_v21 = vpop.f32.mrf.mxu0  ;;  %v3927_v17 = vld [vmem:[%s5029_s12 + $0x1a8] ss:$16 sps:$4 sm:$0xff]  }
 0x75c   :  { %2543 = vmatmul.mubr.bf16.vlgmr.msra.gmra.mxu1 %v2413_v18  ;;  %v3935_v18 = vld [vmem:[%s5029_s12 + $0x18c] ss:$16 sps:$4 sm:$0xff]   ;;  %v3933_v21 = vld [vmem:[%s5029_s12 + $0x188] ss:$16 sps:$4 sm:$0xff]  }
 0x75d   :  { %3074 = vmatpush1.bf16.msra.mxu1 %v3867_v54  ;;  %v3941_v54 = vld [vmem:[%s5029_s12 + $0x16c] ss:$16 sps:$4 sm:$0xff]  }
 0x75e   :  { %3075 = vmatprep.subr.bf16.mxu1 %v3875_v4  ;;  %v3947_v4 = vld [vmem:[%s5029_s12 + $0x14c] ss:$16 sps:$4 sm:$0xff]  }
 0x761   :  { %3076 = vmatpush1.bf16.msra.mxu1 %v3873_v11  ;;  %v3945_v11 = vld [vmem:[%s5029_s12 + $0x148] ss:$16 sps:$4 sm:$0xff]  }
 0x762   :  { %3077 = vmatprep.subr.bf16.mxu1 %v3881_v60  ;;  %v2061_v60 = vsub.s32 2, %v4516_v8 }
 0x765   :  { %3078 = vmatpush1.bf16.msra.mxu1 %v3879_v63  ;;  %v2062_v63 = vrot.slane %v4519_v14, %v2061_v60 }
 0x766   :  { %3079 = vmatprep.subr.bf16.mxu1 %v3887_v53  ;;  %v4752_v53 = vld [vmem:[#allocation11 + $0x8] sm:$0x1f] }
 0x769   :  { %3080 = vmatpush1.bf16.msra.mxu1 %v3885_v13  ;;  %v2066_v13 = vrot.slane %v4752_v53, %v2061_v60 }
 0x76a   :  { %3081 = vmatprep.subr.bf16.mxu1 %v3893_v57  ;;  %v2058_v57 = vadd.f32 %v4656_v7, %v4643_v15 }
 0x76d   :  { %3082 = vmatpush1.bf16.msra.mxu1 %v3891_v0  ;;  %v2067_v0 = vadd.f32 %v2062_v63, %v4645_v19 }
 0x76e   :  { %3083 = vmatprep.subr.bf16.mxu1 %v3899_v58  ;;  %v2069_v58 = vadd.f32 %v2062_v63, %v4652_v56 }
 0x76f   :  { %vm2071_vm10 = vcmp.gt.f32.partialorder %v2067_v0, 0.0 }
 0x770   :  { %vm2073_vm11 = vcmp.gt.f32.partialorder %v2069_v58, 0.0 }
 0x771   :  { %3084 = vmatpush1.bf16.msra.mxu1 %v3897_v61  ;;  %v2068_v61 = vadd.f32 %v2066_v13, %v4650_v20 }
 0x772   :  { %3085 = vmatprep.subr.bf16.mxu1 %v3905_v1  ;;  %v2070_v1 = vadd.f32 %v2066_v13, %v2058_v57 }
 0x773   :  { %vm2072_vm12 = vcmp.gt.f32.partialorder %v2068_v61, 0.0 }
 0x774   :  { %vm2074_vm13 = vcmp.gt.f32.partialorder %v2070_v1, 0.0 }
 0x775   :  { %3086 = vmatpush1.bf16.msra.mxu1 %v3903_v55  ;;  %v2075_v55 = vmin.f32 %v2067_v0, 0.0 }
 0x776   :  { %3087 = vmatprep.subr.bf16.mxu1 %v3911_v2  ;;  %v2077_v2 = vmin.f32 %v2069_v58, 0.0 }
 0x778   :  { %v2083_v14 = vmul.f32 1.442695, %v2077_v2 }
 0x779   :  { %3088 = vmatpush1.bf16.msra.mxu1 %v3909_v6  ;;  %v2076_v6 = vmin.f32 %v2068_v61, 0.0 }
 0x77a   :  { %3089 = vmatprep.subr.bf16.mxu1 %v3917_v62  ;;  %v2078_v62 = vmin.f32 %v2070_v1, 0.0 }
 0x77d   :  { %3090 = vmatpush2.bf16.msra.mxu1 %v3915_v9  ;;  %v2079_v9 = vmul.f32 1.442695, %v2075_v55 }
 0x77e   :  { %3091 = vmatprep.subr.bf16.mxu1 %v3923_v10  ;;  %v2081_v10 = vmul.f32 1.442695, %v2076_v6 }
 0x77f   :  { %3968 = vpow2.f32 %v2079_v9 }
 0x780   :  { %3970 = vpow2.f32 %v2083_v14  ;;  %v3866_v14 = vld [vmem:[%s5029_s12 + $0xe4] ss:$16 sps:$4 sm:$0xff]  }
 0x781   :  { %3092 = vmatpush2.bf16.msra.mxu1 %v3921_v12  ;;  %v2085_v12 = vmul.f32 1.442695, %v2078_v62  ;;  %3972 = vpow2.f32 %v2081_v10  ;;  %v3878_v10 = vld [vmem:[%s5029_s12 + $0xa4] ss:$16 sps:$4 sm:$0xff]  }
 0x782   :  { %3093 = vmatprep.subr.bf16.mxu1 %v3929_v16 }
 0x783   :  { %3974 = vpow2.f32 %v2085_v12  ;;  %v3863_v12 = vld [vmem:[%s5028_s11 + $0x8] sm:$0xff]  }
 0x785   :  { %3094 = vmatpush2.bf16.msra.mxu1 %v3927_v17 }
 0x786   :  { %3095 = vmatprep.subr.bf16.mxu1 %v3935_v18 }
 0x789   :  { %3096 = vmatpush2.bf16.msra.mxu1 %v3933_v21 }
 0x78a   :  { %3097 = vmatprep.subr.bf16.mxu1 %v3941_v54 }
 0x78c   :  { %v3969_v15 = vpop.eup %3968 }
 0x78d   :  { %3098 = vmatpush2.bf16.msra.mxu1 %v3939_v59  ;;  %v3971_v7 = vpop.eup %3970  ;;  %v3382_v56 = vadd.f32 -1.0, %v3969_v15  ;;  %v3876_v15 = vld [vmem:[%s5029_s12 + $0xa0] ss:$16 sps:$4 sm:$0xff]  }
 0x78e   :  { %3099 = vmatprep.subr.bf16.mxu1 %v3947_v4  ;;  %v3973_v19 = vpop.eup %3972  ;;  %v3384_v20 = vadd.f32 -1.0, %v3971_v7  ;;  %v3882_v7 = vld [vmem:[%s5029_s12 + $0x80] ss:$16 sps:$4 sm:$0xff]  }
 0x78f   :  { %v3383_v18 = vadd.f32 -1.0, %v3973_v19  ;;  %v2091_v59 = vsel %vm2071_vm10, %v2067_v0, %v3382_v56  ;;  %v3862_v0 = vld [vmem:[%s5028_s11] sm:$0xff]  }
 0x790   :  { %v3975_v16 = vpop.eup %3974  ;;  %v2093_v4 = vsel %vm2073_vm11, %v2069_v58, %v3384_v20  ;;  %v3864_v58 = vld [vmem:[%s5029_s12 + $0xe0] ss:$16 sps:$4 sm:$0xff]   ;;  %v3890_v19 = vld [vmem:[%s5029_s12 + $0x64] ss:$16 sps:$4 sm:$0xff]  }
 0x791   :  { %3100 = vmatpush2.bf16.msra.mxu1 %v3945_v11  ;;  %v3385_v54 = vadd.f32 -1.0, %v3975_v16  ;;  %v2092_v13 = vsel %vm2072_vm12, %v2068_v61, %v3383_v18  ;;  %v3872_v61 = vld [vmem:[%s5029_s12 + $0xc4] ss:$16 sps:$4 sm:$0xff]   ;;  %v3888_v16 = vld [vmem:[%s5029_s12 + $0x60] ss:$16 sps:$4 sm:$0xff]  }
 0x792   :  { %v3896_v56 = vld [vmem:[%s5029_s12 + $0x44] ss:$16 sps:$4 sm:$0xff]   ;;  %v3900_v18 = vld [vmem:[%s5029_s12 + $0x20] ss:$16 sps:$4 sm:$0xff]  }
 0x793   :  { %v2094_v57 = vsel %vm2074_vm13, %v2070_v1, %v3385_v54  ;;  %v3870_v1 = vld [vmem:[%s5029_s12 + $0xc0] ss:$16 sps:$4 sm:$0xff]   ;;  %v3902_v20 = vld [vmem:[%s5029_s12 + $0x24] ss:$16 sps:$4 sm:$0xff]  }
 0x794   :  { %v3906_v54 = vld [vmem:[%s5029_s12] ss:$16 sps:$4 sm:$0xff]  }
 0x81c   :  { %v2544_v17 = vpop.f32.mrf.mxu1 }
 0x81d   :  { %v2553_v60 = vadd.f32 %v2544_v17, %v2091_v59  ;;  %v3894_v17 = vld [vmem:[%s5029_s12 + $0x40] ss:$16 sps:$4 sm:$0xff]   ;;  %v3914_v59 = vld [vmem:[%s5029_s12 + $0x1e4] ss:$16 sps:$4 sm:$0xff]  }
 0x81e   :  { %v2546_v21 = vpop.f32.mrf.mxu1 }
 0x81f   :  { %v2554_v2 = vadd.f32 %v2546_v21, %v2092_v13  ;;  %v3908_v21 = vld [vmem:[%s5029_s12 + $0x4] ss:$16 sps:$4 sm:$0xff]   ;;  %v3924_v13 = vld [vmem:[%s5029_s12 + $0x1a0] ss:$16 sps:$4 sm:$0xff]  }
 0x820   :  { %v2548_v11 = vpop.f32.mrf.mxu1 }
 0x821   :  { %v2555_v63 = vadd.f32 %v2548_v11, %v2093_v4  ;;  %v3912_v4 = vld [vmem:[%s5029_s12 + $0x1e0] ss:$16 sps:$4 sm:$0xff]   ;;  %v3920_v11 = vld [vmem:[%s5029_s12 + $0x1c4] ss:$16 sps:$4 sm:$0xff]  }
 0x822   :  { %v2550_v55 = vpop.f32.mrf.mxu1 }
 0x823   :  { %v2557_v6 = vpack.c.bf16 %v2555_v63, %v2553_v60  ;;  %v2556_v62 = vadd.f32 %v2550_v55, %v2094_v57  ;;  %v3918_v60 = vld [vmem:[%s5029_s12 + $0x1c0] ss:$16 sps:$4 sm:$0xff]   ;;  %v3926_v63 = vld [vmem:[%s5029_s12 + $0x1a4] ss:$16 sps:$4 sm:$0xff]  }
 0x824   :  { %v3932_v57 = vld [vmem:[%s5029_s12 + $0x184] ss:$16 sps:$4 sm:$0xff]   ;;  %v3930_v55 = vld [vmem:[%s5029_s12 + $0x180] ss:$16 sps:$4 sm:$0xff]  }
 0x825   :  { %v2558_v9 = vpack.c.bf16 %v2556_v62, %v2554_v2  ;;  %v3938_v2 = vld [vmem:[%s5029_s12 + $0x164] ss:$16 sps:$4 sm:$0xff]  }
 0x826   :  { %v3944_v62 = vld [vmem:[%s5029_s12 + $0x144] ss:$16 sps:$4 sm:$0xff]  }
 0x827   :  { %2593 = vmatprep.subr.bf16.mxu0 %v2558_v9  ;;  %v3942_v9 = vld [vmem:[%s5029_s12 + $0x140] ss:$16 sps:$4 sm:$0xff]  }
 0x828   :  { %2594 = vmatpush1.bf16.msra.mxu0 %v2557_v6  ;;  %v3936_v6 = vld [vmem:[%s5029_s12 + $0x160] ss:$16 sps:$4 sm:$0xff]  }
 0x829   :  { %3020 = vmatprep.subr.bf16.mxu0 %v3866_v14  ;;  %v3950_v14 = vld [vmem:[%s5029_s12 + $0x124] ss:$16 sps:$4 sm:$0xff]  }
 0x82b   :  { %3419 = vmatmul.mubr.msk.bf16.vlgmr.msra.gmra.mxu0 %vm1304_vm5, %v3862_v0  ;;  %v3953_v0 = vld [vmem:[%s5029_s12 + $0x12c] ss:$16 sps:$4 sm:$0xff]  }
 0x82c   :  { %2621 = vmatprep.mubr.bf16.mxu0 %v4171_v43  ;;  %3021 = vmatpush1.bf16.msra.mxu0 %v3864_v58  ;;  %v3884_v43 = vld [vmem:[%s5029_s12 + $0x84] ss:$16 sps:$4 sm:$0xff]   ;;  %v3948_v58 = vld [vmem:[%s5029_s12 + $0x120] ss:$16 sps:$4 sm:$0xff]  }
 0x82d   :  { %3022 = vmatprep.subr.bf16.mxu0 %v3872_v61  ;;  %v3951_v61 = vld [vmem:[%s5029_s12 + $0x128] ss:$16 sps:$4 sm:$0xff]   ;;  %3101 = vmatprep.subr.bf16.mxu1 %v3953_v0 }
 0x82e   :  { %3102 = vmatpush2.bf16.msra.mxu1 %v3951_v61 }
 0x830   :  { %3023 = vmatpush1.bf16.msra.mxu0 %v3870_v1  ;;  %v3956_v1 = vld [vmem:[%s5029_s12 + $0x104] ss:$16 sps:$4 sm:$0xff]  }
 0x831   :  { %3024 = vmatprep.subr.bf16.mxu0 %v3878_v10  ;;  %v3959_v10 = vld [vmem:[%s5029_s12 + $0x10c] ss:$16 sps:$4 sm:$0xff]  }
 0x832   :  { %3103 = vmatprep.subr.bf16.mxu1 %v3959_v10 }
 0x833   :  { %3420 = vmatmul.mubr.msk.bf16.gmra.mxu0 %vm1304_vm5, %v3863_v12  ;;  %v3954_v12 = vld [vmem:[%s5029_s12 + $0x100] ss:$16 sps:$4 sm:$0xff]  }
 0x834   :  { %3025 = vmatpush1.bf16.msra.mxu0 %v3876_v15  ;;  %v3957_v15 = vld [vmem:[%s5029_s12 + $0x108] ss:$16 sps:$4 sm:$0xff]   ;;  %s4174_s12 = smov [#allocation13]  }
 0x835   :  { %3026 = vmatprep.subr.bf16.mxu0 %v3884_v43  ;;  %3104 = vmatpush2.bf16.msra.mxu1 %v3957_v15  ;;  %s3179_s28 = sshll.u32 %s4174_s12, 4  ;;  %s3180_s28 = int_to_ptr.vmem [resolvable:$true] %s3179_s28 }
 0x836   :  { %s4129_s14 = scalar_lea.vmem %s3180_s28, 2048  ;;  %p4134_p3 = scmp.lt.s32.totalorder %s3180_s28, %s3180_s28 }
 0x837   :  { %p4130_p2 = scmp.ne.s32.totalorder %s3180_s28, %s4129_s14  ;;  %p4135_p4 = scmp.lt.s32.totalorder %s4129_s14, %s4129_s14 }
 0x838   :  { %3027 = vmatpush1.bf16.msra.mxu0 %v3882_v7 }
 0x839   :  { %3028 = vmatprep.subr.bf16.mxu0 %v3890_v19  ;;  %p4136_p5 = por %p4135_p4, %p4134_p3 }
 0x83b   :  { %p4137_p6 = pnand %p4136_p5, %p4130_p2 }
 0x83c   :  { %3029 = vmatpush1.bf16.msra.mxu0 %v3888_v16 }
 0x83d   :  { %3030 = vmatprep.subr.bf16.mxu0 %v3896_v56 }
 0x840   :  { %3031 = vmatpush1.bf16.msra.mxu0 %v3894_v17 }
 0x841   :  { %3032 = vmatprep.subr.bf16.mxu0 %v3902_v20 }
 0x844   :  { %3033 = vmatpush1.bf16.msra.mxu0 %v3900_v18 }
 0x845   :  { %3034 = vmatprep.subr.bf16.mxu0 %v3908_v21 }
 0x848   :  { %3035 = vmatpush1.bf16.msra.mxu0 %v3906_v54 }
 0x849   :  { %3036 = vmatprep.subr.bf16.mxu0 %v3914_v59 }
 0x84c   :  { %3037 = vmatpush2.bf16.msra.mxu0 %v3912_v4 }
 0x84d   :  { %3038 = vmatprep.subr.bf16.mxu0 %v3920_v11  ;;  %v444_v11 = vsub.s32 4, %v4516_v8 }
 0x850   :  { %3039 = vmatpush2.bf16.msra.mxu0 %v3918_v60  ;;  %v4008_v60 = vld [vmem:[#allocation11] sm:$0x1f] }
 0x851   :  { %3040 = vmatprep.subr.bf16.mxu0 %v3926_v63  ;;  %v445_v63 = vrot.slane %v4008_v60, %v444_v11 }
 0x853   :  { %v4901_v61 = vadd.f32 %v4413_v41, %v445_v63 }
 0x854   :  { %3041 = vmatpush2.bf16.msra.mxu0 %v3924_v13  ;;  %v175_v13 = vld [vmem:[#allocation11 + $0x10] sm:$0x1f] }
 0x855   :  { %3042 = vmatprep.subr.bf16.mxu0 %v3932_v57  ;;  %v449_v57 = vrot.slane %v4752_v53, %v444_v11  ;;  %v674_v41 = vmin.f32 %v4901_v61, 0.0  ;;  %vm658_vm3 = vcmp.gt.f32.partialorder %v4901_v61, 0.0 }
 0x858   :  { %3043 = vmatpush2.bf16.msra.mxu0 %v3930_v55  ;;  %v176_v55 = vld [vmem:[#allocation11 + $0x18] sm:$0x1f] }
 0x859   :  { %3044 = vmatprep.subr.bf16.mxu0 %v3938_v2  ;;  %v453_v2 = vrot.slane %v175_v13, %v444_v11 }
 0x85b   :  { %v4889_v0 = vadd.f32 %v4500_v28, %v453_v2  ;;  %v4905_v28 = vadd.f32 %v4504_v47, %v453_v2  ;;  %v4918_v47 = vadd.f32 %v4508_v49, %v453_v2 }
 0x85c   :  { %3045 = vmatpush2.bf16.msra.mxu0 %v3936_v6  ;;  %v4880_v6 = vadd.f32 %v4405_v37, %v445_v63 }
 0x85d   :  { %3046 = vmatprep.subr.bf16.mxu0 %v3944_v62  ;;  %v4883_v62 = vadd.f32 %v4407_v38, %v449_v57  ;;  %v676_v49 = vmin.f32 %v4918_v47, 0.0  ;;  %vm652_vm15 = vcmp.gt.f32.partialorder %v4889_v0, 0.0  ;;  %vm656_vm6 = vcmp.gt.f32.partialorder %v4905_v28, 0.0 }
 0x85e   :  { %v666_v8 = vmin.f32 %v4880_v6, 0.0  ;;  %vm650_vm14 = vcmp.gt.f32.partialorder %v4880_v6, 0.0  ;;  %vm660_vm9 = vcmp.gt.f32.partialorder %v4918_v47, 0.0 }
 0x85f   :  { %v667_v53 = vmin.f32 %v4883_v62, 0.0  ;;  %vm651_vm0 = vcmp.gt.f32.partialorder %v4883_v62, 0.0 }
 0x860   :  { %3047 = vmatpush2.bf16.msra.mxu0 %v3942_v9  ;;  %v457_v9 = vrot.slane %v176_v55, %v444_v11 }
 0x861   :  { %3048 = vmatprep.subr.bf16.mxu0 %v3950_v14  ;;  %v4886_v14 = vadd.f32 %v4409_v39, %v445_v63  ;;  %v668_v39 = vmin.f32 %v4889_v0, 0.0 }
 0x862   :  { %v4897_v37 = vadd.f32 %v4502_v46, %v457_v9  ;;  %v4913_v15 = vadd.f32 %v4506_v48, %v457_v9  ;;  %v4923_v48 = vadd.f32 %v4510_v50, %v457_v9  ;;  %v4937_v60 = vadd.f32 %v4514_v52, %v457_v9 }
 0x863   :  { %v670_v38 = vmin.f32 %v4886_v14, 0.0  ;;  %vm654_vm1 = vcmp.gt.f32.partialorder %v4886_v14, 0.0 }
 0x864   :  { %3049 = vmatpush2.bf16.msra.mxu0 %v3948_v58  ;;  %v4893_v58 = vadd.f32 %v4411_v40, %v449_v57  ;;  %v4909_v40 = vadd.f32 %v4415_v42, %v449_v57  ;;  %v669_v46 = vmin.f32 %v4897_v37, 0.0  ;;  %v677_v11 = vmin.f32 %v4923_v48, 0.0 }
 0x865   :  { %3050 = vmatprep.subr.bf16.mxu0 %v3956_v1  ;;  %v682_v1 = vmul.f32 1.442695, %v666_v8  ;;  %vm653_vm4 = vcmp.gt.f32.partialorder %v4897_v37, 0.0  ;;  %vm657_vm7 = vcmp.gt.f32.partialorder %v4913_v15, 0.0  ;;  %vm661_vm10 = vcmp.gt.f32.partialorder %v4923_v48, 0.0 }
 0x866   :  { %v671_v10 = vmin.f32 %v4893_v58, 0.0  ;;  %v675_v42 = vmin.f32 %v4909_v40, 0.0  ;;  %vm655_vm2 = vcmp.gt.f32.partialorder %v4893_v58, 0.0  ;;  %vm659_vm5 = vcmp.gt.f32.partialorder %v4909_v40, 0.0 }
 0x867   :  { %3976 = vpow2.f32 %v682_v1  ;;  %vm665_vm12 = vcmp.gt.f32.partialorder %v4937_v60, 0.0 }
 0x868   :  { %3051 = vmatpush2.bf16.msra.mxu0 %v3954_v12  ;;  %v684_v12 = vmul.f32 1.442695, %v667_v53 }
 0x86a   :  { %3978 = vpow2.f32 %v684_v12 }
 0x874   :  { %v3977_v52 = vpop.eup %3976 }
 0x875   :  { %v3238_v12 = vadd.f32 -1.0, %v3977_v52 }
 0x877   :  { %v3979_v53 = vpop.eup %3978 }
 0x8eb   :  { %v2613_v43 = vpop.f32.mrf.mxu0 }
 0x8ed   :  { %v2615_v7 = vpop.f32.mrf.mxu0 }
 0x8ef   :  { %v2617_v19 = vpop.f32.mrf.mxu0 }
 0x8f0   :  { %v2632_v17 = vpack.c.bf16 %v2617_v19, %v2613_v43  ;;  %v690_v43 = vmul.f32 1.442695, %v670_v38  ;;  %v672_v19 = vmin.f32 %v4905_v28, 0.0 }
 0x8f1   :  { %v2619_v16 = vpop.f32.mrf.mxu0 }
 0x8f2   :  { %v2633_v56 = vpack.c.bf16 %v2619_v16, %v2615_v7  ;;  %v686_v7 = vmul.f32 1.442695, %v668_v39  ;;  %v692_v16 = vmul.f32 1.442695, %v671_v10  ;;  %3980 = vpow2.f32 %v690_v43 }
 0x8f3   :  { %v2623_v20 = vpop.f32.mrf.mxu0 }
 0x8f4   :  { %3052 = vmatprep.mubr.bf16.mxu0 %v2633_v56  ;;  %3105 = vmatprep.mubr.bf16.mxu1 %v2633_v56  ;;  %v688_v56 = vmul.f32 1.442695, %v669_v46  ;;  %3982 = vpow2.f32 %v686_v7  ;;  %v3239_v46 = vadd.f32 -1.0, %v3979_v53 }
 0x8f5   :  { %v2625_v18 = vpop.f32.mrf.mxu0  ;;  %3053 = vmatmul.mubr.bf16.vlgmr.msra.gmra.mxu0 %v2632_v17  ;;  %3106 = vmatmul.mubr.bf16.vlgmr.msra.gmra.mxu1 %v2632_v17  ;;  %v673_v17 = vmin.f32 %v4913_v15, 0.0  ;;  %3984 = vpow2.f32 %v692_v16 }
 0x8f6   :  { %3986 = vpow2.f32 %v688_v56 }
 0x8f7   :  { %v2627_v21 = vpop.f32.mrf.mxu0  ;;  %v696_v50 = vmul.f32 1.442695, %v673_v17 }
 0x8f8   :  { %v2634_v4 = vpack.c.bf16 %v2627_v21, %v2623_v20  ;;  %v698_v20 = vmul.f32 1.442695, %v674_v41  ;;  %v694_v21 = vmul.f32 1.442695, %v672_v19 }
 0x8f9   :  { %v2629_v54 = vpop.f32.mrf.mxu0 }
 0x8fa   :  { %v2635_v59 = vpack.c.bf16 %v2629_v54, %v2625_v18  ;;  %v4926_v18 = vadd.f32 %v4417_v44, %v445_v63  ;;  %v4930_v54 = vadd.f32 %v4512_v51, %v453_v2  ;;  %3988 = vpow2.f32 %v698_v20 }
 0x8fb   :  { %3990 = vpow2.f32 %v694_v21  ;;  %v702_v63 = vmul.f32 1.442695, %v676_v49  ;;  %v730_v20 = vsel %vm650_vm14, %v4880_v6, %v3238_v12  ;;  %v731_v21 = vsel %vm651_vm0, %v4883_v62, %v3239_v46 }
 0x8fc   :  { %3062 = vmatprep.mubr.bf16.mxu0 %v2635_v59  ;;  %3115 = vmatprep.mubr.bf16.mxu1 %v2635_v59  ;;  %v700_v59 = vmul.f32 1.442695, %v675_v42  ;;  %v678_v44 = vmin.f32 %v4926_v18, 0.0  ;;  %v680_v51 = vmin.f32 %v4930_v54, 0.0  ;;  %vm662_vm8 = vcmp.gt.f32.partialorder %v4926_v18, 0.0 }
 0x8fd   :  { %3063 = vmatmul.mubr.bf16.gmra.mxu0 %v2634_v4  ;;  %3116 = vmatmul.mubr.bf16.gmra.mxu1 %v2634_v4  ;;  %v4933_v4 = vadd.f32 %v4419_v45, %v449_v57  ;;  %v704_v45 = vmul.f32 1.442695, %v677_v11  ;;  %v681_v57 = vmin.f32 %v4937_v60, 0.0  ;;  %vm664_vm11 = vcmp.gt.f32.partialorder %v4930_v54, 0.0 }
 0x8fe   :  { %3992 = vpow2.f32 %v700_v59  ;;  %v706_v55 = vmul.f32 1.442695, %v678_v44  ;;  %v710_v2 = vmul.f32 1.442695, %v680_v51 }
 0x8ff   :  { %v679_v13 = vmin.f32 %v4933_v4, 0.0  ;;  %3994 = vpow2.f32 %v696_v50  ;;  %v712_v9 = vmul.f32 1.442695, %v681_v57  ;;  %v3981_v38 = vpop.eup %3980  ;;  %vm663_vm13 = vcmp.gt.f32.partialorder %v4933_v4, 0.0 }
 0x900   :  { %3996 = vpow2.f32 %v702_v63  ;;  %v3242_v7 = vadd.f32 -1.0, %v3981_v38 }
 0x901   :  { %v708_v8 = vmul.f32 1.442695, %v679_v13  ;;  %3998 = vpow2.f32 %v704_v45  ;;  %v3983_v39 = vpop.eup %3982 }
 0x902   :  { %4000 = vpow2.f32 %v706_v55  ;;  %v3985_v1 = vpop.eup %3984  ;;  %v3240_v41 = vadd.f32 -1.0, %v3983_v39  ;;  %v734_v11 = vsel %vm654_vm1, %v4886_v14, %v3242_v7 }
 0x903   :  { %4002 = vpow2.f32 %v710_v2  ;;  %v3987_v10 = vpop.eup %3986  ;;  %v3243_v16 = vadd.f32 -1.0, %v3985_v1 }
 0x904   :  { %4004 = vpow2.f32 %v708_v8  ;;  %v3241_v56 = vadd.f32 -1.0, %v3987_v10  ;;  %v732_v59 = vsel %vm652_vm15, %v4889_v0, %v3240_v41 }
 0x905   :  { %4006 = vpow2.f32 %v712_v9  ;;  %v735_v6 = vsel %vm655_vm2, %v4893_v58, %v3243_v16 }
 0x906   :  { %v733_v57 = vsel %vm653_vm4, %v4897_v37, %v3241_v56 }
 0x907   :  { %v3989_v43 = vpop.eup %3988 }
 0x908   :  { %v3991_v19 = vpop.eup %3990  ;;  %v3246_v63 = vadd.f32 -1.0, %v3989_v43 }
 0x909   :  { %v3244_v44 = vadd.f32 -1.0, %v3991_v19 }
 0x90a   :  { %v738_v1 = vsel %vm658_vm3, %v4901_v61, %v3246_v63 }
 0x90b   :  { %v3993_v42 = vpop.eup %3992  ;;  %v736_v58 = vsel %vm656_vm6, %v4905_v28, %v3244_v44 }
 0x90c   :  { %v3995_v17 = vpop.eup %3994  ;;  %v3247_v2 = vadd.f32 -1.0, %v3993_v42 }
 0x90d   :  { %v3997_v51 = vpop.eup %3996  ;;  %v3245_v0 = vadd.f32 -1.0, %v3995_v17 }
 0x90e   :  { %v3999_v14 = vpop.eup %3998  ;;  %v739_v61 = vsel %vm659_vm5, %v4909_v40, %v3247_v2 }
 0x90f   :  { %v4001_v38 = vpop.eup %4000  ;;  %v737_v28 = vsel %vm657_vm7, %v4913_v15, %v3245_v0  ;;  %v3249_v16 = vadd.f32 -1.0, %v3999_v14 }
 0x910   :  { %v4003_v10 = vpop.eup %4002 }
 0x911   :  { %v4005_v41 = vpop.eup %4004  ;;  %v3252_v40 = vadd.f32 -1.0, %v4003_v10  ;;  %v741_v44 = vsel %vm661_vm10, %v4923_v48, %v3249_v16 }
 0x912   :  { %v4007_v42 = vpop.eup %4006 }
 0x913   :  { %v744_v48 = vsel %vm664_vm11, %v4930_v54, %v3252_v40 }
 0x9b5   :  { %v3054_v49 = vpop.f32.mrf.mxu0  ;;  %v3107_v50 = vpop.f32.mrf.mxu1 }
 0x9b6   :  { %v3126_v13 = vmul.f32 %v3054_v49, %v730_v20  ;;  %v3128_v45 = vmul.f32 %v3107_v50, %v732_v59  ;;  %v3250_v49 = vadd.f32 -1.0, %v4001_v38 }
 0x9b7   :  { %v3056_v62 = vpop.f32.mrf.mxu0  ;;  %v3109_v55 = vpop.f32.mrf.mxu1 }
 0x9b8   :  { %v3142_v8 = vadd.f32 %v3126_v13, %v4389_v29  ;;  %v3144_v52 = vadd.f32 %v3128_v45, %v4484_v22  ;;  %v3127_v9 = vmul.f32 %v3056_v62, %v731_v21  ;;  %v3129_v53 = vmul.f32 %v3109_v55, %v733_v57 }
 0x9b9   :  { %v3058_v39 = vpop.f32.mrf.mxu0  ;;  %v3111_v37 = vpop.f32.mrf.mxu1  ;;  %v3248_v29 = vadd.f32 -1.0, %v3997_v51  ;;  %v3253_v51 = vadd.f32 -1.0, %v4007_v42 }
 0x9ba   :  { %3158 = vst [vmem:[#allocation13] sm:$0xff] %v3142_v8  ;;  %3160 = vst [vmem:[#allocation13 + $0x10] sm:$0xff] %v3144_v52  ;;  %v3143_v22 = vadd.f32 %v3127_v9, %v4391_v30  ;;  %v3145_v12 = vadd.f32 %v3129_v53, %v4486_v23  ;;  %v3130_v46 = vmul.f32 %v3058_v39, %v734_v11 }
 0x9bb   :  { %v3132_v43 = vmul.f32 %v3111_v37, %v736_v58  ;;  %v3060_v7 = vpop.f32.mrf.mxu0  ;;  %v3113_v19 = vpop.f32.mrf.mxu1  ;;  %v740_v15 = vsel %vm660_vm9, %v4918_v47, %v3248_v29  ;;  %v3251_v47 = vadd.f32 -1.0, %v4005_v41 }
 0x9bc   :  { %3159 = vst [vmem:[#allocation13 + $0x8] sm:$0xff] %v3143_v22  ;;  %3161 = vst [vmem:[#allocation13 + $0x18] sm:$0xff] %v3145_v12  ;;  %v3146_v30 = vadd.f32 %v3130_v46, %v4393_v31  ;;  %v3131_v56 = vmul.f32 %v3060_v7, %v735_v6  ;;  %v3133_v17 = vmul.f32 %v3113_v19, %v737_v28 }
 0x9bd   :  { %v3148_v23 = vadd.f32 %v3132_v43, %v4488_v24  ;;  %v3064_v20 = vpop.f32.mrf.mxu0  ;;  %v3117_v21 = vpop.f32.mrf.mxu1  ;;  %v742_v6 = vsel %vm662_vm8, %v4926_v18, %v3250_v49  ;;  %v743_v2 = vsel %vm663_vm13, %v4933_v4, %v3251_v47  ;;  %v745_v18 = vsel %vm665_vm12, %v4937_v60, %v3253_v51 }
 0x9be   :  { %3162 = vst [vmem:[#allocation13 + $0x20] sm:$0xff] %v3146_v30  ;;  %v3147_v59 = vadd.f32 %v3131_v56, %v4395_v32  ;;  %v3149_v31 = vadd.f32 %v3133_v17, %v4490_v3  ;;  %v3134_v50 = vmul.f32 %v3064_v20, %v738_v1  ;;  %v3136_v24 = vmul.f32 %v3117_v21, %v740_v15 }
 0x9bf   :  { %3164 = vst [vmem:[#allocation13 + $0x30] sm:$0xff] %v3148_v23  ;;  %v3066_v11 = vpop.f32.mrf.mxu0  ;;  %v3119_v63 = vpop.f32.mrf.mxu1 }
 0x9c0   :  { %3163 = vst [vmem:[#allocation13 + $0x28] sm:$0xff] %v3147_v59  ;;  %3165 = vst [vmem:[#allocation13 + $0x38] sm:$0xff] %v3149_v31  ;;  %v3150_v13 = vadd.f32 %v3134_v50, %v4397_v33  ;;  %v3152_v32 = vadd.f32 %v3136_v24, %v4492_v5  ;;  %v3135_v45 = vmul.f32 %v3066_v11, %v739_v61 }
 0x9c1   :  { %v3137_v3 = vmul.f32 %v3119_v63, %v741_v44  ;;  %v3068_v62 = vpop.f32.mrf.mxu0  ;;  %v3121_v57 = vpop.f32.mrf.mxu1 }
 0x9c2   :  { %3166 = vst [vmem:[#allocation13 + $0x40] sm:$0xff] %v3150_v13  ;;  %3168 = vst [vmem:[#allocation13 + $0x50] sm:$0xff] %v3152_v32  ;;  %v3151_v33 = vadd.f32 %v3135_v45, %v4399_v34  ;;  %v3138_v55 = vmul.f32 %v3068_v62, %v742_v6  ;;  %v3140_v0 = vmul.f32 %v3121_v57, %v744_v48 }
 0x9c3   :  { %v3153_v5 = vadd.f32 %v3137_v3, %v4494_v25  ;;  %v3070_v14 = vpop.f32.mrf.mxu0  ;;  %v3123_v8 = vpop.f32.mrf.mxu1 }
 0x9c4   :  { %3167 = vst [vmem:[#allocation13 + $0x48] sm:$0xff] %v3151_v33  ;;  %v3154_v54 = vadd.f32 %v3138_v55, %v4401_v35  ;;  %v3156_v34 = vadd.f32 %v3140_v0, %v4496_v26  ;;  %v3139_v52 = vmul.f32 %v3070_v14, %v743_v2  ;;  %v3141_v25 = vmul.f32 %v3123_v8, %v745_v18 }
 0x9c5   :  { %3169 = vst [vmem:[#allocation13 + $0x58] sm:$0xff] %v3153_v5 }
 0x9c6   :  { %3170 = vst [vmem:[#allocation13 + $0x60] sm:$0xff] %v3154_v54  ;;  %3172 = vst [vmem:[#allocation13 + $0x70] sm:$0xff] %v3156_v34  ;;  %v3155_v4 = vadd.f32 %v3139_v52, %v4403_v36  ;;  %v3157_v9 = vadd.f32 %v3141_v25, %v4498_v27 }
 0x9c8   :  { %3171 = vst [vmem:[#allocation13 + $0x68] sm:$0xff] %v3155_v4  ;;  %3173 = vst [vmem:[#allocation13 + $0x78] sm:$0xff] %v3157_v9 }
 0x9c9   :  { %4140 = shalt.err (!%p4137_p6)
}
 0x9ca   :  { %3185 = dma.vmem_to_hbm [thread:$0]  %s3180_s28, 2048, %s5033_s16, [#allocation4], %s4168_s26, %s4168_s26, %s4169_s27  }
 0x9cb   :  { %4157 = dma.done.wait [#allocation4], 2048  }
 0x9cc   :  { %4158 = vsyncadd [#allocation4], 4294965248 }
 0x9cd   :  { %3189 = vsyncpa [#allocation3], 1 }
 0x9ce   :  { %3190 = vsyncpa [#allocation6], 1 }
 0x9cf   :  { %3191 = vsyncpa [#allocation9], 1 }
 0x9d0   :  { %3192 = vsyncpa [#allocation12], 1 }
 0x9d1   :  { %3193 = vsyncpa [#allocation4], 1 }

</bundles_post_ra>
